<compile_context>
chip_gen: v6e
topology: v6e:2x2x1
jax: 0.10.0
libtpu: 0.0.40
codegen_flags: <defaults>
</compile_context>

<pallas_src>
import jax
import jax.numpy as jnp
from jax import lax
from jax.experimental import pallas as pl
from jax.experimental.pallas import tpu as pltpu


TILE_B = 4096   # rows per grid step (lane axis); multiple of 128
CHUNK = 512     # rows per inner compute chunk; keeps (32, CHUNK) f32 at 16 vregs


def _mlp_kernel(x_ref, w1_ref, b1_ref, w2_ref, b2_ref, w3_ref, b3_ref, o_ref):
    # Weights / biases are tiny and VMEM-resident; load once per grid step
    # (bias broadcast hoisted out of the inner loop).
    w1 = w1_ref[...]   # (32, 2)
    b1 = b1_ref[...]   # (32, 1)
    w2 = w2_ref[...]   # (32, 32)
    b2 = b2_ref[...]   # (32, 1)
    w3 = w3_ref[...]   # (1, 32)
    b3 = b3_ref[...]   # (1, 1)

    def body(c, carry):
        start = pl.multiple_of(c * CHUNK, CHUNK)
        x = x_ref[:, pl.ds(start, CHUNK)]                                   # (2, CHUNK)

        # Linear(2, 32) + ReLU     -> (32, CHUNK)
        h1 = jnp.dot(w1, x, preferred_element_type=jnp.float32) + b1
        h1 = jnp.maximum(h1, 0.0)

        # Linear(32, 32) + ReLU    -> (32, CHUNK)
        h2 = jnp.dot(w2, h1, preferred_element_type=jnp.float32) + b2
        h2 = jnp.maximum(h2, 0.0)

        # Linear(32, 1) + Sigmoid  -> (1, CHUNK)
        z = jnp.dot(w3, h2, preferred_element_type=jnp.float32) + b3
        o_ref[:, pl.ds(start, CHUNK)] = jax.nn.sigmoid(z).astype(o_ref.dtype)
        return carry

    lax.fori_loop(0, TILE_B // CHUNK, body, 0, unroll=True)


def frontline_nn_forward(x, params):
    """x: (B, 2) float32. params in PyTorch convention: w (out, in), b (out, 1)."""
    B = x.shape[0]
    w1, b1 = params["w1"], params["b1"]
    w2, b2 = params["w2"], params["b2"]
    w3, b3 = params["w3"], params["b3"]

    # Batch on lanes: (2, B), padded to a multiple of TILE_B.
    b_pad = pl.cdiv(B, TILE_B) * TILE_B
    x_t = jnp.zeros((2, b_pad), jnp.float32).at[:, :B].set(x.T)
    n_tiles = b_pad // TILE_B

    resident = lambda shape: pl.BlockSpec(shape, lambda i: (0, 0))

    out_t = pl.pallas_call(
        _mlp_kernel,
        out_shape=jax.ShapeDtypeStruct((1, b_pad), jnp.float32),
        grid=(n_tiles,),
        in_specs=[
            pl.BlockSpec((2, TILE_B), lambda i: (0, i)),     # x tile (pipelined)
            resident(w1.shape), resident(b1.shape),
            resident(w2.shape), resident(b2.shape),
            resident(w3.shape), resident(b3.shape),
        ],
        out_specs=pl.BlockSpec((1, TILE_B), lambda i: (0, i)),
        compiler_params=pltpu.CompilerParams(
            dimension_semantics=("parallel",),
        ),
    )(x_t, w1, b1, w2, b2, w3, b3)

    # Back to the PyTorch-facing (B, 1) layout.
    return out_t[:, :B].T


def init_params(key):
    """Deterministic init matching nn.Linear shapes.
    PyTorch nn.Linear(in, out): weight (out, in), bias (out,).
    We keep weight as (out, in) and bias as (out, 1) for the lanes-on-batch kernel."""
    k1, k2, k3, k4, k5, k6 = jax.random.split(key, 6)

    def uniform(k, shape, fan_in):
        bound = 1.0 / jnp.sqrt(jnp.float32(fan_in))
        return jax.random.uniform(k, shape, jnp.float32, -bound, bound)

    return {
        "w1": uniform(k1, (32, 2), 2),
        "b1": uniform(k2, (32, 1), 2),
        "w2": uniform(k3, (32, 32), 32),
        "b2": uniform(k4, (32, 1), 32),
        "w3": uniform(k5, (1, 32), 32),
        "b3": uniform(k6, (1, 1), 32),
    }


def _reference_forward(x, p):
    h1 = jnp.maximum(x @ p["w1"].T + p["b1"].T, 0.0)
    h2 = jnp.maximum(h1 @ p["w2"].T + p["b2"].T, 0.0)
    return jax.nn.sigmoid(h2 @ p["w3"].T + p["b3"].T)


if __name__ == "__main__":
    key = jax.random.PRNGKey(0)
    kx, kp = jax.random.split(key)

    # Small shape for correctness validation (perf should be measured at B >= 64K).
    B = 8
    x = jax.random.normal(kx, (B, 2), jnp.float32)
    params = init_params(kp)

    out = frontline_nn_forward(x, params)
    out = jax.block_until_ready(out)

    ref = _reference_forward(x, params)
    assert out.shape == (B, 1), out.shape
    assert jnp.allclose(out, ref, atol=1e-5, rtol=1e-5), "mismatch vs reference"

    print("KERNEL_OK")
</pallas_src>

<mosaic_0001>
module attributes {stable_mosaic.version = 11 : i64} {
  func.func @_mlp_kernel(%arg0: i32, %arg1: memref<2x4096xf32, #tpu.memory_space<vmem>>, %arg2: memref<32x2xf32, #tpu.memory_space<vmem>>, %arg3: memref<32x1xf32, #tpu.memory_space<vmem>>, %arg4: memref<32x32xf32, #tpu.memory_space<vmem>>, %arg5: memref<32x1xf32, #tpu.memory_space<vmem>>, %arg6: memref<1x32xf32, #tpu.memory_space<vmem>>, %arg7: memref<1x1xf32, #tpu.memory_space<vmem>>, %arg8: memref<1x4096xf32, #tpu.memory_space<vmem>>) attributes {dimension_semantics = [#tpu.dimension_semantics<parallel>], iteration_bounds = array<i64: 1>, scalar_prefetch = 0 : i64, scratch_operands = 0 : i64, tpu.core_type = #tpu.core_type<tc>, window_params = [{transform_indices = @transform_0, window_bounds = array<i64: 2, 4096>}, {pipeline_mode = #tpu.pipeline_mode<synchronous>, transform_indices = @transform_1, window_bounds = array<i64: 32, 2>}, {pipeline_mode = #tpu.pipeline_mode<synchronous>, transform_indices = @transform_2, window_bounds = array<i64: 32, 1>}, {pipeline_mode = #tpu.pipeline_mode<synchronous>, transform_indices = @transform_3, window_bounds = array<i64: 32, 32>}, {pipeline_mode = #tpu.pipeline_mode<synchronous>, transform_indices = @transform_4, window_bounds = array<i64: 32, 1>}, {pipeline_mode = #tpu.pipeline_mode<synchronous>, transform_indices = @transform_5, window_bounds = array<i64: 1, 32>}, {pipeline_mode = #tpu.pipeline_mode<synchronous>, transform_indices = @transform_6, window_bounds = array<i64: 1, 1>}, {transform_indices = @transform_7, window_bounds = array<i64: 1, 4096>}]} {
    %c0 = arith.constant 0 : index
    %c0_0 = arith.constant 0 : index
    %0 = vector.load %arg2[%c0, %c0_0] : memref<32x2xf32, #tpu.memory_space<vmem>>, vector<32x2xf32>
    %c0_1 = arith.constant 0 : index
    %c0_2 = arith.constant 0 : index
    %1 = vector.load %arg3[%c0_1, %c0_2] : memref<32x1xf32, #tpu.memory_space<vmem>>, vector<32x1xf32>
    %c0_3 = arith.constant 0 : index
    %c0_4 = arith.constant 0 : index
    %2 = vector.load %arg4[%c0_3, %c0_4] : memref<32x32xf32, #tpu.memory_space<vmem>>, vector<32x32xf32>
    %c0_5 = arith.constant 0 : index
    %c0_6 = arith.constant 0 : index
    %3 = vector.load %arg5[%c0_5, %c0_6] : memref<32x1xf32, #tpu.memory_space<vmem>>, vector<32x1xf32>
    %c0_7 = arith.constant 0 : index
    %c0_8 = arith.constant 0 : index
    %4 = vector.load %arg6[%c0_7, %c0_8] : memref<1x32xf32, #tpu.memory_space<vmem>>, vector<1x32xf32>
    %c0_9 = arith.constant 0 : index
    %c0_10 = arith.constant 0 : index
    %5 = vector.load %arg7[%c0_9, %c0_10] : memref<1x1xf32, #tpu.memory_space<vmem>>, vector<1x1xf32>
    %c0_i32 = arith.constant 0 : i32
    %c512_i32 = arith.constant 512 : i32
    %6 = arith.muli %c0_i32, %c512_i32 : i32
    %7 = tpu.assume_multiple %6, 512 : i32
    %c0_11 = arith.constant 0 : index
    %8 = arith.index_cast %7 : i32 to index
    %9 = vector.load %arg1[%c0_11, %8] : memref<2x4096xf32, #tpu.memory_space<vmem>>, vector<2x512xf32>
    %cst = arith.constant dense<0.000000e+00> : vector<32x512xf32>
    %10 = tpu.matmul %0, %9, %cst {dimension_numbers = #tpu.dot_dimension_numbers<[1], [0], [0], [1], [0, 0, 1, 1], [], []>} : vector<32x2xf32>, vector<2x512xf32>, vector<32x512xf32> -> vector<32x512xf32>
    %11 = vector.broadcast %1 : vector<32x1xf32> to vector<32x512xf32>
    %12 = arith.addf %10, %11 : vector<32x512xf32>
    %cst_12 = arith.constant 0.000000e+00 : f32
    %13 = vector.broadcast %cst_12 : f32 to vector<32x512xf32>
    %14 = arith.maximumf %12, %13 : vector<32x512xf32>
    %cst_13 = arith.constant dense<0.000000e+00> : vector<32x512xf32>
    %15 = tpu.matmul %2, %14, %cst_13 {dimension_numbers = #tpu.dot_dimension_numbers<[1], [0], [0], [1], [0, 0, 1, 1], [], []>} : vector<32x32xf32>, vector<32x512xf32>, vector<32x512xf32> -> vector<32x512xf32>
    %16 = vector.broadcast %3 : vector<32x1xf32> to vector<32x512xf32>
    %17 = arith.addf %15, %16 : vector<32x512xf32>
    %cst_14 = arith.constant 0.000000e+00 : f32
    %18 = vector.broadcast %cst_14 : f32 to vector<32x512xf32>
    %19 = arith.maximumf %17, %18 : vector<32x512xf32>
    %cst_15 = arith.constant dense<0.000000e+00> : vector<1x512xf32>
    %20 = tpu.matmul %4, %19, %cst_15 {dimension_numbers = #tpu.dot_dimension_numbers<[1], [0], [0], [1], [0, 0, 1, 1], [], []>} : vector<1x32xf32>, vector<32x512xf32>, vector<1x512xf32> -> vector<1x512xf32>
    %21 = vector.broadcast %5 : vector<1x1xf32> to vector<1x512xf32>
    %22 = arith.addf %20, %21 : vector<1x512xf32>
    %23 = arith.negf %22 : vector<1x512xf32>
    %24 = math.exp %23 : vector<1x512xf32>
    %cst_16 = arith.constant 1.000000e+00 : f32
    %25 = vector.broadcast %cst_16 : f32 to vector<1x512xf32>
    %26 = arith.addf %25, %24 : vector<1x512xf32>
    %27 = arith.divf %25, %26 : vector<1x512xf32>
    %c0_17 = arith.constant 0 : index
    %28 = arith.index_cast %7 : i32 to index
    %29 = vector.load %arg8[%c0_17, %28] : memref<1x4096xf32, #tpu.memory_space<vmem>>, vector<1x512xf32>
    tpu.vector_store %arg8[%c0_17, %28], %27 {strides = array<i32>} : memref<1x4096xf32, #tpu.memory_space<vmem>>, vector<1x512xf32>,
    %c1_i32 = arith.constant 1 : i32
    %c512_i32_18 = arith.constant 512 : i32
    %30 = arith.muli %c1_i32, %c512_i32_18 : i32
    %31 = tpu.assume_multiple %30, 512 : i32
    %c0_19 = arith.constant 0 : index
    %32 = arith.index_cast %31 : i32 to index
    %33 = vector.load %arg1[%c0_19, %32] : memref<2x4096xf32, #tpu.memory_space<vmem>>, vector<2x512xf32>
    %cst_20 = arith.constant dense<0.000000e+00> : vector<32x512xf32>
    %34 = tpu.matmul %0, %33, %cst_20 {dimension_numbers = #tpu.dot_dimension_numbers<[1], [0], [0], [1], [0, 0, 1, 1], [], []>} : vector<32x2xf32>, vector<2x512xf32>, vector<32x512xf32> -> vector<32x512xf32>
    %35 = vector.broadcast %1 : vector<32x1xf32> to vector<32x512xf32>
    %36 = arith.addf %34, %35 : vector<32x512xf32>
    %cst_21 = arith.constant 0.000000e+00 : f32
    %37 = vector.broadcast %cst_21 : f32 to vector<32x512xf32>
    %38 = arith.maximumf %36, %37 : vector<32x512xf32>
    %cst_22 = arith.constant dense<0.000000e+00> : vector<32x512xf32>
    %39 = tpu.matmul %2, %38, %cst_22 {dimension_numbers = #tpu.dot_dimension_numbers<[1], [0], [0], [1], [0, 0, 1, 1], [], []>} : vector<32x32xf32>, vector<32x512xf32>, vector<32x512xf32> -> vector<32x512xf32>
    %40 = vector.broadcast %3 : vector<32x1xf32> to vector<32x512xf32>
    %41 = arith.addf %39, %40 : vector<32x512xf32>
    %cst_23 = arith.constant 0.000000e+00 : f32
    %42 = vector.broadcast %cst_23 : f32 to vector<32x512xf32>
    %43 = arith.maximumf %41, %42 : vector<32x512xf32>
    %cst_24 = arith.constant dense<0.000000e+00> : vector<1x512xf32>
    %44 = tpu.matmul %4, %43, %cst_24 {dimension_numbers = #tpu.dot_dimension_numbers<[1], [0], [0], [1], [0, 0, 1, 1], [], []>} : vector<1x32xf32>, vector<32x512xf32>, vector<1x512xf32> -> vector<1x512xf32>
    %45 = vector.broadcast %5 : vector<1x1xf32> to vector<1x512xf32>
    %46 = arith.addf %44, %45 : vector<1x512xf32>
    %47 = arith.negf %46 : vector<1x512xf32>
    %48 = math.exp %47 : vector<1x512xf32>
    %cst_25 = arith.constant 1.000000e+00 : f32
    %49 = vector.broadcast %cst_25 : f32 to vector<1x512xf32>
    %50 = arith.addf %49, %48 : vector<1x512xf32>
    %51 = arith.divf %49, %50 : vector<1x512xf32>
    %c0_26 = arith.constant 0 : index
    %52 = arith.index_cast %31 : i32 to index
    %53 = vector.load %arg8[%c0_26, %52] : memref<1x4096xf32, #tpu.memory_space<vmem>>, vector<1x512xf32>
    tpu.vector_store %arg8[%c0_26, %52], %51 {strides = array<i32>} : memref<1x4096xf32, #tpu.memory_space<vmem>>, vector<1x512xf32>,
    %c2_i32 = arith.constant 2 : i32
    %c512_i32_27 = arith.constant 512 : i32
    %54 = arith.muli %c2_i32, %c512_i32_27 : i32
    %55 = tpu.assume_multiple %54, 512 : i32
    %c0_28 = arith.constant 0 : index
    %56 = arith.index_cast %55 : i32 to index
    %57 = vector.load %arg1[%c0_28, %56] : memref<2x4096xf32, #tpu.memory_space<vmem>>, vector<2x512xf32>
    %cst_29 = arith.constant dense<0.000000e+00> : vector<32x512xf32>
    %58 = tpu.matmul %0, %57, %cst_29 {dimension_numbers = #tpu.dot_dimension_numbers<[1], [0], [0], [1], [0, 0, 1, 1], [], []>} : vector<32x2xf32>, vector<2x512xf32>, vector<32x512xf32> -> vector<32x512xf32>
    %59 = vector.broadcast %1 : vector<32x1xf32> to vector<32x512xf32>
    %60 = arith.addf %58, %59 : vector<32x512xf32>
    %cst_30 = arith.constant 0.000000e+00 : f32
    %61 = vector.broadcast %cst_30 : f32 to vector<32x512xf32>
    %62 = arith.maximumf %60, %61 : vector<32x512xf32>
    %cst_31 = arith.constant dense<0.000000e+00> : vector<32x512xf32>
    %63 = tpu.matmul %2, %62, %cst_31 {dimension_numbers = #tpu.dot_dimension_numbers<[1], [0], [0], [1], [0, 0, 1, 1], [], []>} : vector<32x32xf32>, vector<32x512xf32>, vector<32x512xf32> -> vector<32x512xf32>
    %64 = vector.broadcast %3 : vector<32x1xf32> to vector<32x512xf32>
    %65 = arith.addf %63, %64 : vector<32x512xf32>
    %cst_32 = arith.constant 0.000000e+00 : f32
    %66 = vector.broadcast %cst_32 : f32 to vector<32x512xf32>
    %67 = arith.maximumf %65, %66 : vector<32x512xf32>
    %cst_33 = arith.constant dense<0.000000e+00> : vector<1x512xf32>
    %68 = tpu.matmul %4, %67, %cst_33 {dimension_numbers = #tpu.dot_dimension_numbers<[1], [0], [0], [1], [0, 0, 1, 1], [], []>} : vector<1x32xf32>, vector<32x512xf32>, vector<1x512xf32> -> vector<1x512xf32>
    %69 = vector.broadcast %5 : vector<1x1xf32> to vector<1x512xf32>
    %70 = arith.addf %68, %69 : vector<1x512xf32>
    %71 = arith.negf %70 : vector<1x512xf32>
    %72 = math.exp %71 : vector<1x512xf32>
    %cst_34 = arith.constant 1.000000e+00 : f32
    %73 = vector.broadcast %cst_34 : f32 to vector<1x512xf32>
    %74 = arith.addf %73, %72 : vector<1x512xf32>
    %75 = arith.divf %73, %74 : vector<1x512xf32>
    %c0_35 = arith.constant 0 : index
    %76 = arith.index_cast %55 : i32 to index
    %77 = vector.load %arg8[%c0_35, %76] : memref<1x4096xf32, #tpu.memory_space<vmem>>, vector<1x512xf32>
    tpu.vector_store %arg8[%c0_35, %76], %75 {strides = array<i32>} : memref<1x4096xf32, #tpu.memory_space<vmem>>, vector<1x512xf32>,
    %c3_i32 = arith.constant 3 : i32
    %c512_i32_36 = arith.constant 512 : i32
    %78 = arith.muli %c3_i32, %c512_i32_36 : i32
    %79 = tpu.assume_multiple %78, 512 : i32
    %c0_37 = arith.constant 0 : index
    %80 = arith.index_cast %79 : i32 to index
    %81 = vector.load %arg1[%c0_37, %80] : memref<2x4096xf32, #tpu.memory_space<vmem>>, vector<2x512xf32>
    %cst_38 = arith.constant dense<0.000000e+00> : vector<32x512xf32>
    %82 = tpu.matmul %0, %81, %cst_38 {dimension_numbers = #tpu.dot_dimension_numbers<[1], [0], [0], [1], [0, 0, 1, 1], [], []>} : vector<32x2xf32>, vector<2x512xf32>, vector<32x512xf32> -> vector<32x512xf32>
    %83 = vector.broadcast %1 : vector<32x1xf32> to vector<32x512xf32>
    %84 = arith.addf %82, %83 : vector<32x512xf32>
    %cst_39 = arith.constant 0.000000e+00 : f32
    %85 = vector.broadcast %cst_39 : f32 to vector<32x512xf32>
    %86 = arith.maximumf %84, %85 : vector<32x512xf32>
    %cst_40 = arith.constant dense<0.000000e+00> : vector<32x512xf32>
    %87 = tpu.matmul %2, %86, %cst_40 {dimension_numbers = #tpu.dot_dimension_numbers<[1], [0], [0], [1], [0, 0, 1, 1], [], []>} : vector<32x32xf32>, vector<32x512xf32>, vector<32x512xf32> -> vector<32x512xf32>
    %88 = vector.broadcast %3 : vector<32x1xf32> to vector<32x512xf32>
    %89 = arith.addf %87, %88 : vector<32x512xf32>
    %cst_41 = arith.constant 0.000000e+00 : f32
    %90 = vector.broadcast %cst_41 : f32 to vector<32x512xf32>
    %91 = arith.maximumf %89, %90 : vector<32x512xf32>
    %cst_42 = arith.constant dense<0.000000e+00> : vector<1x512xf32>
    %92 = tpu.matmul %4, %91, %cst_42 {dimension_numbers = #tpu.dot_dimension_numbers<[1], [0], [0], [1], [0, 0, 1, 1], [], []>} : vector<1x32xf32>, vector<32x512xf32>, vector<1x512xf32> -> vector<1x512xf32>
    %93 = vector.broadcast %5 : vector<1x1xf32> to vector<1x512xf32>
    %94 = arith.addf %92, %93 : vector<1x512xf32>
    %95 = arith.negf %94 : vector<1x512xf32>
    %96 = math.exp %95 : vector<1x512xf32>
    %cst_43 = arith.constant 1.000000e+00 : f32
    %97 = vector.broadcast %cst_43 : f32 to vector<1x512xf32>
    %98 = arith.addf %97, %96 : vector<1x512xf32>
    %99 = arith.divf %97, %98 : vector<1x512xf32>
    %c0_44 = arith.constant 0 : index
    %100 = arith.index_cast %79 : i32 to index
    %101 = vector.load %arg8[%c0_44, %100] : memref<1x4096xf32, #tpu.memory_space<vmem>>, vector<1x512xf32>
    tpu.vector_store %arg8[%c0_44, %100], %99 {strides = array<i32>} : memref<1x4096xf32, #tpu.memory_space<vmem>>, vector<1x512xf32>,
    %c4_i32 = arith.constant 4 : i32
    %c512_i32_45 = arith.constant 512 : i32
    %102 = arith.muli %c4_i32, %c512_i32_45 : i32
    %103 = tpu.assume_multiple %102, 512 : i32
    %c0_46 = arith.constant 0 : index
    %104 = arith.index_cast %103 : i32 to index
    %105 = vector.load %arg1[%c0_46, %104] : memref<2x4096xf32, #tpu.memory_space<vmem>>, vector<2x512xf32>
    %cst_47 = arith.constant dense<0.000000e+00> : vector<32x512xf32>
    %106 = tpu.matmul %0, %105, %cst_47 {dimension_numbers = #tpu.dot_dimension_numbers<[1], [0], [0], [1], [0, 0, 1, 1], [], []>} : vector<32x2xf32>, vector<2x512xf32>, vector<32x512xf32> -> vector<32x512xf32>
    %107 = vector.broadcast %1 : vector<32x1xf32> to vector<32x512xf32>
    %108 = arith.addf %106, %107 : vector<32x512xf32>
    %cst_48 = arith.constant 0.000000e+00 : f32
    %109 = vector.broadcast %cst_48 : f32 to vector<32x512xf32>
    %110 = arith.maximumf %108, %109 : vector<32x512xf32>
    %cst_49 = arith.constant dense<0.000000e+00> : vector<32x512xf32>
    %111 = tpu.matmul %2, %110, %cst_49 {dimension_numbers = #tpu.dot_dimension_numbers<[1], [0], [0], [1], [0, 0, 1, 1], [], []>} : vector<32x32xf32>, vector<32x512xf32>, vector<32x512xf32> -> vector<32x512xf32>
    %112 = vector.broadcast %3 : vector<32x1xf32> to vector<32x512xf32>
    %113 = arith.addf %111, %112 : vector<32x512xf32>
    %cst_50 = arith.constant 0.000000e+00 : f32
    %114 = vector.broadcast %cst_50 : f32 to vector<32x512xf32>
    %115 = arith.maximumf %113, %114 : vector<32x512xf32>
    %cst_51 = arith.constant dense<0.000000e+00> : vector<1x512xf32>
    %116 = tpu.matmul %4, %115, %cst_51 {dimension_numbers = #tpu.dot_dimension_numbers<[1], [0], [0], [1], [0, 0, 1, 1], [], []>} : vector<1x32xf32>, vector<32x512xf32>, vector<1x512xf32> -> vector<1x512xf32>
    %117 = vector.broadcast %5 : vector<1x1xf32> to vector<1x512xf32>
    %118 = arith.addf %116, %117 : vector<1x512xf32>
    %119 = arith.negf %118 : vector<1x512xf32>
    %120 = math.exp %119 : vector<1x512xf32>
    %cst_52 = arith.constant 1.000000e+00 : f32
    %121 = vector.broadcast %cst_52 : f32 to vector<1x512xf32>
    %122 = arith.addf %121, %120 : vector<1x512xf32>
    %123 = arith.divf %121, %122 : vector<1x512xf32>
    %c0_53 = arith.constant 0 : index
    %124 = arith.index_cast %103 : i32 to index
    %125 = vector.load %arg8[%c0_53, %124] : memref<1x4096xf32, #tpu.memory_space<vmem>>, vector<1x512xf32>
    tpu.vector_store %arg8[%c0_53, %124], %123 {strides = array<i32>} : memref<1x4096xf32, #tpu.memory_space<vmem>>, vector<1x512xf32>,
    %c5_i32 = arith.constant 5 : i32
    %c512_i32_54 = arith.constant 512 : i32
    %126 = arith.muli %c5_i32, %c512_i32_54 : i32
    %127 = tpu.assume_multiple %126, 512 : i32
    %c0_55 = arith.constant 0 : index
    %128 = arith.index_cast %127 : i32 to index
    %129 = vector.load %arg1[%c0_55, %128] : memref<2x4096xf32, #tpu.memory_space<vmem>>, vector<2x512xf32>
    %cst_56 = arith.constant dense<0.000000e+00> : vector<32x512xf32>
    %130 = tpu.matmul %0, %129, %cst_56 {dimension_numbers = #tpu.dot_dimension_numbers<[1], [0], [0], [1], [0, 0, 1, 1], [], []>} : vector<32x2xf32>, vector<2x512xf32>, vector<32x512xf32> -> vector<32x512xf32>
    %131 = vector.broadcast %1 : vector<32x1xf32> to vector<32x512xf32>
    %132 = arith.addf %130, %131 : vector<32x512xf32>
    %cst_57 = arith.constant 0.000000e+00 : f32
    %133 = vector.broadcast %cst_57 : f32 to vector<32x512xf32>
    %134 = arith.maximumf %132, %133 : vector<32x512xf32>
    %cst_58 = arith.constant dense<0.000000e+00> : vector<32x512xf32>
    %135 = tpu.matmul %2, %134, %cst_58 {dimension_numbers = #tpu.dot_dimension_numbers<[1], [0], [0], [1], [0, 0, 1, 1], [], []>} : vector<32x32xf32>, vector<32x512xf32>, vector<32x512xf32> -> vector<32x512xf32>
    %136 = vector.broadcast %3 : vector<32x1xf32> to vector<32x512xf32>
    %137 = arith.addf %135, %136 : vector<32x512xf32>
    %cst_59 = arith.constant 0.000000e+00 : f32
    %138 = vector.broadcast %cst_59 : f32 to vector<32x512xf32>
    %139 = arith.maximumf %137, %138 : vector<32x512xf32>
    %cst_60 = arith.constant dense<0.000000e+00> : vector<1x512xf32>
    %140 = tpu.matmul %4, %139, %cst_60 {dimension_numbers = #tpu.dot_dimension_numbers<[1], [0], [0], [1], [0, 0, 1, 1], [], []>} : vector<1x32xf32>, vector<32x512xf32>, vector<1x512xf32> -> vector<1x512xf32>
    %141 = vector.broadcast %5 : vector<1x1xf32> to vector<1x512xf32>
    %142 = arith.addf %140, %141 : vector<1x512xf32>
    %143 = arith.negf %142 : vector<1x512xf32>
    %144 = math.exp %143 : vector<1x512xf32>
    %cst_61 = arith.constant 1.000000e+00 : f32
    %145 = vector.broadcast %cst_61 : f32 to vector<1x512xf32>
    %146 = arith.addf %145, %144 : vector<1x512xf32>
    %147 = arith.divf %145, %146 : vector<1x512xf32>
    %c0_62 = arith.constant 0 : index
    %148 = arith.index_cast %127 : i32 to index
    %149 = vector.load %arg8[%c0_62, %148] : memref<1x4096xf32, #tpu.memory_space<vmem>>, vector<1x512xf32>
    tpu.vector_store %arg8[%c0_62, %148], %147 {strides = array<i32>} : memref<1x4096xf32, #tpu.memory_space<vmem>>, vector<1x512xf32>,
    %c6_i32 = arith.constant 6 : i32
    %c512_i32_63 = arith.constant 512 : i32
    %150 = arith.muli %c6_i32, %c512_i32_63 : i32
    %151 = tpu.assume_multiple %150, 512 : i32
    %c0_64 = arith.constant 0 : index
    %152 = arith.index_cast %151 : i32 to index
    %153 = vector.load %arg1[%c0_64, %152] : memref<2x4096xf32, #tpu.memory_space<vmem>>, vector<2x512xf32>
    %cst_65 = arith.constant dense<0.000000e+00> : vector<32x512xf32>
    %154 = tpu.matmul %0, %153, %cst_65 {dimension_numbers = #tpu.dot_dimension_numbers<[1], [0], [0], [1], [0, 0, 1, 1], [], []>} : vector<32x2xf32>, vector<2x512xf32>, vector<32x512xf32> -> vector<32x512xf32>
    %155 = vector.broadcast %1 : vector<32x1xf32> to vector<32x512xf32>
    %156 = arith.addf %154, %155 : vector<32x512xf32>
    %cst_66 = arith.constant 0.000000e+00 : f32
    %157 = vector.broadcast %cst_66 : f32 to vector<32x512xf32>
    %158 = arith.maximumf %156, %157 : vector<32x512xf32>
    %cst_67 = arith.constant dense<0.000000e+00> : vector<32x512xf32>
    %159 = tpu.matmul %2, %158, %cst_67 {dimension_numbers = #tpu.dot_dimension_numbers<[1], [0], [0], [1], [0, 0, 1, 1], [], []>} : vector<32x32xf32>, vector<32x512xf32>, vector<32x512xf32> -> vector<32x512xf32>
    %160 = vector.broadcast %3 : vector<32x1xf32> to vector<32x512xf32>
    %161 = arith.addf %159, %160 : vector<32x512xf32>
    %cst_68 = arith.constant 0.000000e+00 : f32
    %162 = vector.broadcast %cst_68 : f32 to vector<32x512xf32>
    %163 = arith.maximumf %161, %162 : vector<32x512xf32>
    %cst_69 = arith.constant dense<0.000000e+00> : vector<1x512xf32>
    %164 = tpu.matmul %4, %163, %cst_69 {dimension_numbers = #tpu.dot_dimension_numbers<[1], [0], [0], [1], [0, 0, 1, 1], [], []>} : vector<1x32xf32>, vector<32x512xf32>, vector<1x512xf32> -> vector<1x512xf32>
    %165 = vector.broadcast %5 : vector<1x1xf32> to vector<1x512xf32>
    %166 = arith.addf %164, %165 : vector<1x512xf32>
    %167 = arith.negf %166 : vector<1x512xf32>
    %168 = math.exp %167 : vector<1x512xf32>
    %cst_70 = arith.constant 1.000000e+00 : f32
    %169 = vector.broadcast %cst_70 : f32 to vector<1x512xf32>
    %170 = arith.addf %169, %168 : vector<1x512xf32>
    %171 = arith.divf %169, %170 : vector<1x512xf32>
    %c0_71 = arith.constant 0 : index
    %172 = arith.index_cast %151 : i32 to index
    %173 = vector.load %arg8[%c0_71, %172] : memref<1x4096xf32, #tpu.memory_space<vmem>>, vector<1x512xf32>
    tpu.vector_store %arg8[%c0_71, %172], %171 {strides = array<i32>} : memref<1x4096xf32, #tpu.memory_space<vmem>>, vector<1x512xf32>,
    %c7_i32 = arith.constant 7 : i32
    %c512_i32_72 = arith.constant 512 : i32
    %174 = arith.muli %c7_i32, %c512_i32_72 : i32
    %175 = tpu.assume_multiple %174, 512 : i32
    %c0_73 = arith.constant 0 : index
    %176 = arith.index_cast %175 : i32 to index
    %177 = vector.load %arg1[%c0_73, %176] : memref<2x4096xf32, #tpu.memory_space<vmem>>, vector<2x512xf32>
    %cst_74 = arith.constant dense<0.000000e+00> : vector<32x512xf32>
    %178 = tpu.matmul %0, %177, %cst_74 {dimension_numbers = #tpu.dot_dimension_numbers<[1], [0], [0], [1], [0, 0, 1, 1], [], []>} : vector<32x2xf32>, vector<2x512xf32>, vector<32x512xf32> -> vector<32x512xf32>
    %179 = vector.broadcast %1 : vector<32x1xf32> to vector<32x512xf32>
    %180 = arith.addf %178, %179 : vector<32x512xf32>
    %cst_75 = arith.constant 0.000000e+00 : f32
    %181 = vector.broadcast %cst_75 : f32 to vector<32x512xf32>
    %182 = arith.maximumf %180, %181 : vector<32x512xf32>
    %cst_76 = arith.constant dense<0.000000e+00> : vector<32x512xf32>
    %183 = tpu.matmul %2, %182, %cst_76 {dimension_numbers = #tpu.dot_dimension_numbers<[1], [0], [0], [1], [0, 0, 1, 1], [], []>} : vector<32x32xf32>, vector<32x512xf32>, vector<32x512xf32> -> vector<32x512xf32>
    %184 = vector.broadcast %3 : vector<32x1xf32> to vector<32x512xf32>
    %185 = arith.addf %183, %184 : vector<32x512xf32>
    %cst_77 = arith.constant 0.000000e+00 : f32
    %186 = vector.broadcast %cst_77 : f32 to vector<32x512xf32>
    %187 = arith.maximumf %185, %186 : vector<32x512xf32>
    %cst_78 = arith.constant dense<0.000000e+00> : vector<1x512xf32>
    %188 = tpu.matmul %4, %187, %cst_78 {dimension_numbers = #tpu.dot_dimension_numbers<[1], [0], [0], [1], [0, 0, 1, 1], [], []>} : vector<1x32xf32>, vector<32x512xf32>, vector<1x512xf32> -> vector<1x512xf32>
    %189 = vector.broadcast %5 : vector<1x1xf32> to vector<1x512xf32>
    %190 = arith.addf %188, %189 : vector<1x512xf32>
    %191 = arith.negf %190 : vector<1x512xf32>
    %192 = math.exp %191 : vector<1x512xf32>
    %cst_79 = arith.constant 1.000000e+00 : f32
    %193 = vector.broadcast %cst_79 : f32 to vector<1x512xf32>
    %194 = arith.addf %193, %192 : vector<1x512xf32>
    %195 = arith.divf %193, %194 : vector<1x512xf32>
    %c0_80 = arith.constant 0 : index
    %196 = arith.index_cast %175 : i32 to index
    %197 = vector.load %arg8[%c0_80, %196] : memref<1x4096xf32, #tpu.memory_space<vmem>>, vector<1x512xf32>
    tpu.vector_store %arg8[%c0_80, %196], %195 {strides = array<i32>} : memref<1x4096xf32, #tpu.memory_space<vmem>>, vector<1x512xf32>,
    %c8_i32 = arith.constant 8 : i32
    return
  }
  func.func @transform_0(%arg0: i32) -> (i32, i32) {
    %c0_i32 = arith.constant 0 : i32
    %c0_i32_0 = arith.constant 0 : i32
    return %c0_i32, %arg0 : i32, i32
  }
  func.func @transform_1(%arg0: i32) -> (i32, i32) {
    %c0_i32 = arith.constant 0 : i32
    %c0_i32_0 = arith.constant 0 : i32
    %c0_i32_1 = arith.constant 0 : i32
    return %c0_i32, %c0_i32_0 : i32, i32
  }
  func.func @transform_2(%arg0: i32) -> (i32, i32) {
    %c0_i32 = arith.constant 0 : i32
    %c0_i32_0 = arith.constant 0 : i32
    %c0_i32_1 = arith.constant 0 : i32
    return %c0_i32, %c0_i32_0 : i32, i32
  }
  func.func @transform_3(%arg0: i32) -> (i32, i32) {
    %c0_i32 = arith.constant 0 : i32
    %c0_i32_0 = arith.constant 0 : i32
    %c0_i32_1 = arith.constant 0 : i32
    return %c0_i32, %c0_i32_0 : i32, i32
  }
  func.func @transform_4(%arg0: i32) -> (i32, i32) {
    %c0_i32 = arith.constant 0 : i32
    %c0_i32_0 = arith.constant 0 : i32
    %c0_i32_1 = arith.constant 0 : i32
    return %c0_i32, %c0_i32_0 : i32, i32
  }
  func.func @transform_5(%arg0: i32) -> (i32, i32) {
    %c0_i32 = arith.constant 0 : i32
    %c0_i32_0 = arith.constant 0 : i32
    %c0_i32_1 = arith.constant 0 : i32
    return %c0_i32, %c0_i32_0 : i32, i32
  }
  func.func @transform_6(%arg0: i32) -> (i32, i32) {
    %c0_i32 = arith.constant 0 : i32
    %c0_i32_0 = arith.constant 0 : i32
    %c0_i32_1 = arith.constant 0 : i32
    return %c0_i32, %c0_i32_0 : i32, i32
  }
  func.func @transform_7(%arg0: i32) -> (i32, i32) {
    %c0_i32 = arith.constant 0 : i32
    %c0_i32_0 = arith.constant 0 : i32
    return %c0_i32, %arg0 : i32, i32
  }
}

</mosaic_0001>

<bundles_post_ra>
// kernel: tpu_custom_call.1
= control target key start
LH: loop header
LB: loop body
LE: loop exit
PB: predicated region body
PF: predicated region fallthrough
CT: control target
= control target key end

     0   :  { %s6519_s0 = inlined_call_operand.vmem [shape: f32[2,4096], index: 0, kind: input, shape index: {}]   ;;  %s6520_s1 = inlined_call_operand.vmem [shape: f32[32,2], index: 1, kind: input, shape index: {}]   ;;  %s6521_s2 = inlined_call_operand.vmem [shape: f32[32,1], index: 2, kind: input, shape index: {}]   ;;  %s6522_s3 = inlined_call_operand.vmem [shape: f32[32,32], index: 3, kind: input, shape index: {}]   ;;  %s6523_s4 = inlined_call_operand.vmem [shape: f32[32,1], index: 4, kind: input, shape index: {}]   ;;  %s6524_s5 = inlined_call_operand.vmem [shape: f32[1,32], index: 5, kind: input, shape index: {}]   ;;  %s6525_s6 = inlined_call_operand.<no memory space> [shape: f32[1,1], index: 6, kind: input, shape index: {}]   ;;  %s6526_s7 = inlined_call_operand.hbm [shape: f32[1,4096], index: 7, kind: output, shape index: {}]  }
   0x1   :  { %v12_v0 = vstv %s6525_s6 }
   0x2   :  { %13 = vst [vmem:[#allocation2] sm:$0x1] %v12_v0 }
   0x3   :  { %v47_v1 = vld [vmem:[%s6519_s0] sm:$0xff]  ;;  %v73_v2 = vlaneseq  ;;  %v5444_v3 = vmov 1983009808   ;;  %v5445_v6 = vmov 0.0   ;;  %v36_v7 = vld [vmem:[%s6521_s2 + $0x18] sm:$0xff]  ;;  %v34_v8 = vld [vmem:[%s6521_s2 + $0x8] sm:$0xff] }
   0x4   :  { %v71_v4 = vunpack.c.l.s4 %v5444_v3  ;;  %172 = vmatprep.mubr.f32.mxu0 %v5445_v6  ;;  %261 = vmatprep.mubr.f32.mxu1 %v5445_v6  ;;  %v69_v10 = vcombine.high %v47_v1, %v47_v1  ;;  %v5446_v11 = vmov 0   ;;  %v35_v13 = vld [vmem:[%s6521_s2 + $0x10] sm:$0xff]  ;;  %v33_v14 = vld [vmem:[%s6521_s2] sm:$0xff] }
   0x5   :  { %v5496_v5 = vshrl.u32 %v73_v2, 7  ;;  %5267 = vset.pattern.permute.xlu1 %v5446_v11  ;;  %5266 = vset.pattern.permute.xlu0 %v5446_v11 }
   0x6   :  { %v72_v9 = vunpack.c.0.s8 %v71_v4  ;;  %65 = vperm.xlu0 %5266, %v36_v7   ;;  %55 = vperm.xlu1 %5267, %v34_v8  }
   0x8   :  { %v5507_v12 = vsub.s32 %v72_v9, %v5496_v5 }
   0x9   :  { %14 = vsyncpa [#allocation4], 0  ;;  %vm99_vm0 = vcmask 1041408   ;;  %v5520_v19 = vld [vmem:[%s6520_s1] sm:$0xff]  ;;  %vm86_vm1 = vcmask 15360   ;;  %v44_v20 = vld [vmem:[%s6523_s4 + $0x18] sm:$0xff] }
   0xa   :  { %v76_v15 = vrot.slane %v47_v1, %v5507_v12  ;;  %v83_v16 = vrot.slane %v69_v10, %v5507_v12  ;;  %60 = vperm.xlu0 %5266, %v35_v13   ;;  %50 = vperm.xlu1 %5267, %v33_v14   ;;  %v43_v21 = vld [vmem:[%s6523_s4 + $0x10] sm:$0xff]  ;;  %v5541_v22 = vld [vmem:[%s6520_s1 + $0x8] sm:$0xff]  ;;  %v41_v24 = vld [vmem:[%s6523_s4] sm:$0xff]  ;;  %vm322_vm2 = vcmask 261120   ;;  %vm5762_vm3 = vcmp.lt.s32.totalorder %v73_v2, 512 }
   0xb   :  { %v42_v23 = vld [vmem:[%s6523_s4 + $0x8] sm:$0xff]  ;;  %v5558_v25 = vld [vmem:[%s6520_s1 + $0x10] sm:$0xff]  ;;  %v46_v26 = vld [vmem:[#allocation2] sm:$0x1] }
   0xc   :  { %v84_v17 = vcombine.high %v76_v15, %v76_v15  ;;  %v85_v18 = vcombine.high %v83_v16, %v83_v16  ;;  %v5569_v27 = vld [vmem:[%s6520_s1 + $0x18] sm:$0xff] }
   0xe   :  { %5046 = vmatprep.subr.msk.mxu0 %vm99_vm0, %v84_v17  ;;  %5052 = vmatprep.subr.msk.mxu1 %vm99_vm0, %v85_v18 }
   0xf   :  { %5047 = vmatpush1.msk.msra.mxu0 %vm99_vm0, %v76_v15  ;;  %5053 = vmatpush1.msk.msra.mxu1 %vm99_vm0, %v83_v16 }
  0x10   :  { %5048 = vmatmul.mubr.msk.f32.vlgmr.msra.gmra.mxu0 %vm86_vm1, %v5520_v19  ;;  %5054 = vmatmul.mubr.msk.f32.vlgmr.msra.gmra.mxu1 %vm86_vm1, %v5520_v19 }
  0x11   :  { %178 = vmatprep.mubr.f32.mxu0 %v5445_v6  ;;  %267 = vmatprep.mubr.f32.mxu1 %v5445_v6 }
  0x12   :  { %319 = vperm.xlu0 %5266, %v44_v20   ;;  %314 = vperm.xlu1 %5267, %v43_v21   ;;  %v5604_v21 = vld [vmem:[%s6522_s3] sm:$0xff] }
  0x14   :  { %5049 = vmatmul.mubr.msk.f32.gmra.mxu0 %vm86_vm1, %v5541_v22  ;;  %5055 = vmatmul.mubr.msk.f32.gmra.mxu1 %vm86_vm1, %v5541_v22 }
  0x15   :  { %184 = vmatprep.mubr.f32.mxu0 %v5445_v6  ;;  %273 = vmatprep.mubr.f32.mxu1 %v5445_v6 }
  0x16   :  { %309 = vperm.xlu0 %5266, %v42_v23   ;;  %304 = vperm.xlu1 %5267, %v41_v24   ;;  %v5615_v23 = vld [vmem:[%s6522_s3 + $0x8] sm:$0xff]  ;;  %v5626_v24 = vld [vmem:[%s6522_s3 + $0x10] sm:$0xff] }
  0x18   :  { %5050 = vmatmul.mubr.msk.f32.gmra.mxu0 %vm86_vm1, %v5558_v25  ;;  %5056 = vmatmul.mubr.msk.f32.gmra.mxu1 %vm86_vm1, %v5558_v25 }
  0x19   :  { %190 = vmatprep.mubr.f32.mxu0 %v5445_v6  ;;  %279 = vmatprep.mubr.f32.mxu1 %v5445_v6 }
  0x1a   :  { %531 = vperm.xlu0 %5266, %v46_v26   ;;  %v5637_v26 = vld [vmem:[%s6522_s3 + $0x18] sm:$0xff] }
  0x1c   :  { %5051 = vmatmul.mubr.msk.f32.gmra.mxu0 %vm86_vm1, %v5569_v27  ;;  %5057 = vmatmul.mubr.msk.f32.gmra.mxu1 %vm86_vm1, %v5569_v27 }
  0x1d   :  { %399 = vmatprep.mubr.f32.mxu0 %v5445_v6  ;;  %488 = vmatprep.mubr.f32.mxu1 %v5445_v6 }
  0x81   :  { %v5577_v36 = vpop.permute.xlu0 %65  ;;  %v5579_v41 = vpop.permute.xlu1 %55 }
  0x85   :  { %v5581_v44 = vpop.permute.xlu0 %60  ;;  %v5591_v55 = vpop.permute.xlu1 %50 }
  0xd0   :  { %v174_v28 = vpop.f32.mrf.mxu0  ;;  %v263_v29 = vpop.f32.mrf.mxu1 }
  0xd1   :  { %v175_v7 = vadd.f32 %v174_v28, %v5591_v55  ;;  %v264_v8 = vadd.f32 %v263_v29, %v5591_v55 }
  0xd2   :  { %v176_v30 = vpop.f32.mrf.mxu0  ;;  %v265_v31 = vpop.f32.mrf.mxu1 }
  0xd3   :  { %v177_v0 = vadd.f32 %v176_v30, %v5591_v55  ;;  %v266_v1 = vadd.f32 %v265_v31, %v5591_v55  ;;  %v286_v18 = vmax.f32 %v175_v7, 0.0  ;;  %v288_v20 = vmax.f32 %v264_v8, 0.0 }
  0xd4   :  { %v180_v32 = vpop.f32.mrf.mxu0  ;;  %v269_v33 = vpop.f32.mrf.mxu1 }
  0xd5   :  { %v181_v60 = vadd.f32 %v180_v32, %v5579_v41  ;;  %v270_v61 = vadd.f32 %v269_v33, %v5579_v41  ;;  %v287_v16 = vmax.f32 %v177_v0, 0.0  ;;  %v289_v17 = vmax.f32 %v266_v1, 0.0 }
  0xd6   :  { %v182_v34 = vpop.f32.mrf.mxu0  ;;  %v271_v35 = vpop.f32.mrf.mxu1 }
  0xd7   :  { %v183_v56 = vadd.f32 %v182_v34, %v5579_v41  ;;  %v272_v57 = vadd.f32 %v271_v35, %v5579_v41  ;;  %v290_v14 = vmax.f32 %v181_v60, 0.0  ;;  %v292_v15 = vmax.f32 %v270_v61, 0.0 }
  0xd8   :  { %v186_v37 = vpop.f32.mrf.mxu0  ;;  %v275_v38 = vpop.f32.mrf.mxu1 }
  0xd9   :  { %v187_v53 = vadd.f32 %v186_v37, %v5581_v44  ;;  %v276_v54 = vadd.f32 %v275_v38, %v5581_v44  ;;  %v291_v11 = vmax.f32 %v183_v56, 0.0  ;;  %v293_v13 = vmax.f32 %v272_v57, 0.0 }
  0xda   :  { %v188_v39 = vpop.f32.mrf.mxu0  ;;  %v277_v40 = vpop.f32.mrf.mxu1 }
  0xdb   :  { %v189_v49 = vadd.f32 %v188_v39, %v5581_v44  ;;  %v278_v50 = vadd.f32 %v277_v40, %v5581_v44  ;;  %v294_v9 = vmax.f32 %v187_v53, 0.0  ;;  %v296_v10 = vmax.f32 %v276_v54, 0.0  ;;  %v5645_v39 = vpop.permute.xlu0 %319  ;;  %v5072_v40 = vld [vmem:[%s6519_s0 + $0x8] sm:$0xff] }
  0xdc   :  { %v192_v42 = vpop.f32.mrf.mxu0  ;;  %v281_v43 = vpop.f32.mrf.mxu1  ;;  %v751_v61 = vrot.slane %v5072_v40, %v5507_v12 }
  0xdd   :  { %v193_v45 = vadd.f32 %v192_v42, %v5577_v36  ;;  %v282_v46 = vadd.f32 %v281_v43, %v5577_v36  ;;  %v295_v3 = vmax.f32 %v189_v49, 0.0  ;;  %v297_v4 = vmax.f32 %v278_v50, 0.0 }
  0xde   :  { %v194_v47 = vpop.f32.mrf.mxu0  ;;  %v283_v48 = vpop.f32.mrf.mxu1 }
  0xdf   :  { %v195_v51 = vadd.f32 %v194_v47, %v5577_v36  ;;  %v284_v52 = vadd.f32 %v283_v48, %v5577_v36  ;;  %v298_v62 = vmax.f32 %v193_v45, 0.0  ;;  %v300_v63 = vmax.f32 %v282_v46, 0.0  ;;  %v5650_v45 = vpop.permute.xlu1 %314 }
  0xe0   :  { %v744_v48 = vcombine.high %v5072_v40, %v5072_v40 }
  0xe1   :  { %v299_v58 = vmax.f32 %v195_v51, 0.0  ;;  %v301_v59 = vmax.f32 %v284_v52, 0.0 }
  0xe3   :  { %359 = vmatprep.subr.mxu0 %v299_v58  ;;  %448 = vmatprep.subr.mxu1 %v301_v59  ;;  %v5658_v58 = vpop.permute.xlu0 %309 }
  0xe4   :  { %360 = vmatpush1.msra.mxu0 %v298_v62  ;;  %449 = vmatpush1.msra.mxu1 %v300_v63  ;;  %v758_v62 = vrot.slane %v744_v48, %v5507_v12 }
  0xe5   :  { %361 = vmatprep.subr.mxu0 %v295_v3  ;;  %450 = vmatprep.subr.mxu1 %v297_v4  ;;  %v5666_v4 = vpop.permute.xlu1 %304 }
  0xe6   :  { %362 = vmatpush1.msra.mxu0 %v294_v9  ;;  %451 = vmatpush1.msra.mxu1 %v296_v10  ;;  %v760_v40 = vcombine.high %v758_v62, %v758_v62 }
  0xe7   :  { %363 = vmatprep.subr.mxu0 %v291_v11  ;;  %452 = vmatprep.subr.mxu1 %v293_v13 }
  0xe8   :  { %364 = vmatpush1.msra.mxu0 %v290_v14  ;;  %453 = vmatpush1.msra.mxu1 %v292_v15 }
  0xe9   :  { %365 = vmatprep.subr.mxu0 %v287_v16  ;;  %454 = vmatprep.subr.mxu1 %v289_v17 }
  0xea   :  { %366 = vmatpush1.msra.mxu0 %v286_v18  ;;  %455 = vmatpush1.msra.mxu1 %v288_v20 }
  0xeb   :  { %5058 = vmatmul.mubr.msk.f32.vlgmr.msra.gmra.mxu0 %vm322_vm2, %v5604_v21  ;;  %5062 = vmatmul.mubr.msk.f32.vlgmr.msra.gmra.mxu1 %vm322_vm2, %v5604_v21 }
  0xec   :  { %405 = vmatprep.mubr.f32.mxu0 %v5445_v6  ;;  %494 = vmatprep.mubr.f32.mxu1 %v5445_v6 }
  0xef   :  { %5059 = vmatmul.mubr.msk.f32.gmra.mxu0 %vm322_vm2, %v5615_v23  ;;  %5063 = vmatmul.mubr.msk.f32.gmra.mxu1 %vm322_vm2, %v5615_v23 }
  0xf0   :  { %411 = vmatprep.mubr.f32.mxu0 %v5445_v6  ;;  %500 = vmatprep.mubr.f32.mxu1 %v5445_v6 }
  0xf3   :  { %5060 = vmatmul.mubr.msk.f32.gmra.mxu0 %vm322_vm2, %v5626_v24  ;;  %5064 = vmatmul.mubr.msk.f32.gmra.mxu1 %vm322_vm2, %v5626_v24 }
  0xf4   :  { %417 = vmatprep.mubr.f32.mxu0 %v5445_v6  ;;  %506 = vmatprep.mubr.f32.mxu1 %v5445_v6 }
  0xf7   :  { %5061 = vmatmul.mubr.msk.f32.gmra.mxu0 %vm322_vm2, %v5637_v26  ;;  %5065 = vmatmul.mubr.msk.f32.gmra.mxu1 %vm322_vm2, %v5637_v26 }
  0xf8   :  { %605 = vmatprep.mubr.f32.mxu0 %v5445_v6  ;;  %676 = vmatprep.mubr.f32.mxu1 %v5445_v6 }
 0x1ab   :  { %v401_v28 = vpop.f32.mrf.mxu0  ;;  %v490_v29 = vpop.f32.mrf.mxu1 }
 0x1ac   :  { %v402_v16 = vadd.f32 %v401_v28, %v5666_v4  ;;  %v491_v17 = vadd.f32 %v490_v29, %v5666_v4  ;;  %v5677_v29 = vld [vmem:[%s6524_s5] sm:$0x1] }
 0x1ad   :  { %v403_v30 = vpop.f32.mrf.mxu0  ;;  %v492_v31 = vpop.f32.mrf.mxu1 }
 0x1ae   :  { %v404_v11 = vadd.f32 %v403_v30, %v5666_v4  ;;  %v493_v13 = vadd.f32 %v492_v31, %v5666_v4  ;;  %v515_v28 = vmax.f32 %v491_v17, 0.0 }
 0x1af   :  { %v407_v32 = vpop.f32.mrf.mxu0  ;;  %v496_v33 = vpop.f32.mrf.mxu1 }
 0x1b0   :  { %v408_v7 = vadd.f32 %v407_v32, %v5658_v58  ;;  %v497_v8 = vadd.f32 %v496_v33, %v5658_v58  ;;  %v514_v31 = vmax.f32 %v404_v11, 0.0 }
 0x1b1   :  { %v409_v34 = vpop.f32.mrf.mxu0  ;;  %v498_v35 = vpop.f32.mrf.mxu1 }
 0x1b2   :  { %v410_v63 = vadd.f32 %v409_v34, %v5658_v58  ;;  %v499_v0 = vadd.f32 %v498_v35, %v5658_v58  ;;  %v517_v34 = vmax.f32 %v408_v7, 0.0  ;;  %v519_v30 = vmax.f32 %v497_v8, 0.0 }
 0x1b3   :  { %v413_v37 = vpop.f32.mrf.mxu0  ;;  %v502_v38 = vpop.f32.mrf.mxu1  ;;  %v516_v35 = vmax.f32 %v493_v13, 0.0 }
 0x1b4   :  { %v414_v59 = vadd.f32 %v413_v37, %v5650_v45  ;;  %v503_v60 = vadd.f32 %v502_v38, %v5650_v45  ;;  %v518_v32 = vmax.f32 %v410_v63, 0.0  ;;  %v520_v33 = vmax.f32 %v499_v0, 0.0 }
 0x1b5   :  { %v415_v42 = vpop.f32.mrf.mxu0  ;;  %v504_v43 = vpop.f32.mrf.mxu1  ;;  %v513_v37 = vmax.f32 %v402_v16, 0.0  ;;  %v759_v38 = vcombine.high %v751_v61, %v751_v61 }
 0x1b6   :  { %v416_v53 = vadd.f32 %v415_v42, %v5650_v45  ;;  %v505_v54 = vadd.f32 %v504_v43, %v5650_v45  ;;  %v521_v18 = vmax.f32 %v414_v59, 0.0  ;;  %v523_v20 = vmax.f32 %v503_v60, 0.0  ;;  %v532_v43 = vpop.permute.xlu0 %531 }
 0x1b7   :  { %v419_v46 = vpop.f32.mrf.mxu0  ;;  %v508_v47 = vpop.f32.mrf.mxu1  ;;  %v536_v42 = vsub.s32 0, %v5496_v5 }
 0x1b8   :  { %v420_v49 = vadd.f32 %v419_v46, %v5645_v39  ;;  %v509_v50 = vadd.f32 %v508_v47, %v5645_v39  ;;  %v522_v14 = vmax.f32 %v416_v53, 0.0  ;;  %v524_v15 = vmax.f32 %v505_v54, 0.0 }
 0x1b9   :  { %v421_v51 = vpop.f32.mrf.mxu0  ;;  %v510_v52 = vpop.f32.mrf.mxu1  ;;  %v5714_v46 = vrot.slane %v532_v43, %v536_v42 }
 0x1ba   :  { %v422_v56 = vadd.f32 %v421_v51, %v5645_v39  ;;  %v511_v57 = vadd.f32 %v510_v52, %v5645_v39  ;;  %v525_v9 = vmax.f32 %v420_v49, 0.0  ;;  %v527_v10 = vmax.f32 %v509_v50, 0.0 }
 0x1bc   :  { %v526_v1 = vmax.f32 %v422_v56, 0.0  ;;  %v528_v3 = vmax.f32 %v511_v57, 0.0 }
 0x1be   :  { %565 = vmatprep.subr.mxu0 %v526_v1  ;;  %636 = vmatprep.subr.mxu1 %v528_v3 }
 0x1bf   :  { %566 = vmatpush1.msra.mxu0 %v525_v9  ;;  %637 = vmatpush1.msra.mxu1 %v527_v10 }
 0x1c0   :  { %567 = vmatprep.subr.mxu0 %v522_v14  ;;  %638 = vmatprep.subr.mxu1 %v524_v15 }
 0x1c1   :  { %568 = vmatpush1.msra.mxu0 %v521_v18  ;;  %639 = vmatpush1.msra.mxu1 %v523_v20 }
 0x1c2   :  { %569 = vmatprep.subr.mxu0 %v518_v32  ;;  %640 = vmatprep.subr.mxu1 %v520_v33 }
 0x1c3   :  { %570 = vmatpush1.msra.mxu0 %v517_v34  ;;  %641 = vmatpush1.msra.mxu1 %v519_v30 }
 0x1c4   :  { %571 = vmatprep.subr.mxu0 %v514_v31  ;;  %642 = vmatprep.subr.mxu1 %v516_v35 }
 0x1c5   :  { %572 = vmatpush1.msra.mxu0 %v513_v37  ;;  %643 = vmatpush1.msra.mxu1 %v515_v28 }
 0x1c6   :  { %5066 = vmatmul.mubr.msk.f32.vlgmr.msra.gmra.mxu0 %vm322_vm2, %v5677_v29  ;;  %5067 = vmatmul.mubr.msk.f32.vlgmr.msra.gmra.mxu1 %vm322_vm2, %v5677_v29 }
 0x1c7   :  { %5073 = vmatprep.subr.msk.mxu0 %vm99_vm0, %v759_v38  ;;  %5079 = vmatprep.subr.msk.mxu1 %vm99_vm0, %v760_v40 }
 0x1c8   :  { %5074 = vmatpush1.msk.msra.mxu0 %vm99_vm0, %v751_v61  ;;  %833 = vmatprep.mubr.f32.mxu0 %v5445_v6 }
 0x1c9   :  { %5080 = vmatpush1.msk.msra.mxu1 %vm99_vm0, %v758_v62  ;;  %922 = vmatprep.mubr.f32.mxu1 %v5445_v6 }
 0x1ca   :  { %5075 = vmatmul.mubr.msk.f32.vlgmr.msra.gmra.mxu0 %vm86_vm1, %v5520_v19  ;;  %5081 = vmatmul.mubr.msk.f32.vlgmr.msra.gmra.mxu1 %vm86_vm1, %v5520_v19 }
 0x1cb   :  { %839 = vmatprep.mubr.f32.mxu0 %v5445_v6  ;;  %928 = vmatprep.mubr.f32.mxu1 %v5445_v6 }
 0x1ce   :  { %5076 = vmatmul.mubr.msk.f32.gmra.mxu0 %vm86_vm1, %v5541_v22  ;;  %5082 = vmatmul.mubr.msk.f32.gmra.mxu1 %vm86_vm1, %v5541_v22 }
 0x1cf   :  { %845 = vmatprep.mubr.f32.mxu0 %v5445_v6  ;;  %934 = vmatprep.mubr.f32.mxu1 %v5445_v6 }
 0x1d2   :  { %5077 = vmatmul.mubr.msk.f32.gmra.mxu0 %vm86_vm1, %v5558_v25  ;;  %5083 = vmatmul.mubr.msk.f32.gmra.mxu1 %vm86_vm1, %v5558_v25 }
 0x1d3   :  { %851 = vmatprep.mubr.f32.mxu0 %v5445_v6  ;;  %940 = vmatprep.mubr.f32.mxu1 %v5445_v6 }
 0x1d6   :  { %5078 = vmatmul.mubr.msk.f32.gmra.mxu0 %vm86_vm1, %v5569_v27  ;;  %5084 = vmatmul.mubr.msk.f32.gmra.mxu1 %vm86_vm1, %v5569_v27 }
 0x1d7   :  { %1027 = vmatprep.mubr.f32.mxu0 %v5445_v6  ;;  %1116 = vmatprep.mubr.f32.mxu1 %v5445_v6 }
 0x286   :  { %v607_v47 = vpop.f32.mrf.mxu0  ;;  %v678_v48 = vpop.f32.mrf.mxu1 }
 0x287   :  { %v608_v49 = vadd.f32 %v607_v47, %v5714_v46  ;;  %v679_v50 = vadd.f32 %v678_v48, %v5714_v46 }
 0x288   :  { %v609_v51 = vpop.f32.mrf.mxu0  ;;  %v680_v52 = vpop.f32.mrf.mxu1 }
 0x289   :  { %v5068_v53 = vmul.f32 -1.442695, %v608_v49  ;;  %v5070_v54 = vmul.f32 -1.442695, %v679_v50  ;;  %v610_v56 = vadd.f32 %v609_v51, %v5714_v46  ;;  %v681_v57 = vadd.f32 %v680_v52, %v5714_v46 }
 0x28a   :  { %v835_v59 = vpop.f32.mrf.mxu0  ;;  %v924_v60 = vpop.f32.mrf.mxu1 }
 0x28b   :  { %5276 = vpow2.f32 %v5068_v53  ;;  %v5069_v61 = vmul.f32 -1.442695, %v610_v56  ;;  %v5071_v62 = vmul.f32 -1.442695, %v681_v57  ;;  %v836_v16 = vadd.f32 %v835_v59, %v5591_v55 }
 0x28c   :  { %5278 = vpow2.f32 %v5070_v54  ;;  %v837_v63 = vpop.f32.mrf.mxu0  ;;  %v926_v0 = vpop.f32.mrf.mxu1 }
 0x28d   :  { %5280 = vpow2.f32 %v5069_v61  ;;  %v838_v17 = vadd.f32 %v837_v63, %v5591_v55  ;;  %v927_v63 = vadd.f32 %v926_v0, %v5591_v55  ;;  %v947_v0 = vmax.f32 %v836_v16, 0.0 }
 0x28e   :  { %5282 = vpow2.f32 %v5071_v62  ;;  %v841_v1 = vpop.f32.mrf.mxu0  ;;  %v930_v3 = vpop.f32.mrf.mxu1 }
 0x28f   :  { %v842_v20 = vadd.f32 %v841_v1, %v5579_v41  ;;  %v931_v59 = vadd.f32 %v930_v3, %v5579_v41  ;;  %v5447_v3 = vmov 1966171168  }
 0x290   :  { %v843_v7 = vpop.f32.mrf.mxu0  ;;  %v932_v8 = vpop.f32.mrf.mxu1 }
 0x291   :  { %v844_v32 = vadd.f32 %v843_v7, %v5579_v41  ;;  %v933_v33 = vadd.f32 %v932_v8, %v5579_v41  ;;  %v925_v8 = vadd.f32 %v924_v60, %v5591_v55 }
 0x292   :  { %v847_v9 = vpop.f32.mrf.mxu0  ;;  %v936_v10 = vpop.f32.mrf.mxu1 }
 0x293   :  { %v848_v47 = vadd.f32 %v847_v9, %v5581_v44  ;;  %v937_v52 = vadd.f32 %v936_v10, %v5581_v44  ;;  %v952_v9 = vmax.f32 %v844_v32, 0.0 }
 0x294   :  { %v849_v11 = vpop.f32.mrf.mxu0  ;;  %v938_v13 = vpop.f32.mrf.mxu1 }
 0x295   :  { %v850_v28 = vadd.f32 %v849_v11, %v5581_v44  ;;  %v939_v48 = vadd.f32 %v938_v13, %v5581_v44  ;;  %v955_v1 = vmax.f32 %v848_v47, 0.0  ;;  %v957_v10 = vmax.f32 %v937_v52, 0.0 }
 0x296   :  { %v853_v14 = vpop.f32.mrf.mxu0  ;;  %v942_v15 = vpop.f32.mrf.mxu1  ;;  %v951_v11 = vmax.f32 %v842_v20, 0.0  ;;  %v954_v13 = vmax.f32 %v933_v33, 0.0 }
 0x297   :  { %v854_v34 = vadd.f32 %v853_v14, %v5577_v36  ;;  %v943_v38 = vadd.f32 %v942_v15, %v5577_v36  ;;  %v956_v61 = vmax.f32 %v850_v28, 0.0  ;;  %v958_v7 = vmax.f32 %v939_v48, 0.0 }
 0x298   :  { %v5277_v18 = vpop.eup %5276  ;;  %v855_v30 = vpop.f32.mrf.mxu0  ;;  %v714_v14 = vunpack.c.l.s4 %v5447_v3  ;;  %v948_v15 = vmax.f32 %v838_v17, 0.0 }
 0x299   :  { %v944_v31 = vpop.f32.mrf.mxu1  ;;  %v5279_v35 = vpop.eup %5278  ;;  %v695_v37 = vadd.f32 1.0, %v5277_v18  ;;  %v856_v40 = vadd.f32 %v855_v30, %v5577_v36  ;;  %v959_v56 = vmax.f32 %v854_v34, 0.0  ;;  %v961_v62 = vmax.f32 %v943_v38, 0.0 }
 0x29a   :  { %v5281_v42 = vpop.eup %5280  ;;  %v697_v43 = vadd.f32 1.0, %v5279_v35  ;;  %v945_v49 = vadd.f32 %v944_v31, %v5577_v36  ;;  %v953_v18 = vmax.f32 %v931_v59, 0.0  ;;  %v950_v34 = vmax.f32 %v927_v63, 0.0 }
 0x29b   :  { %v5283_v50 = vpop.eup %5282  ;;  %5284 = vrcp.f32 %v695_v37  ;;  %v696_v51 = vadd.f32 1.0, %v5281_v42  ;;  %v960_v53 = vmax.f32 %v856_v40, 0.0  ;;  %v949_v30 = vmax.f32 %v925_v8, 0.0 }
 0x29c   :  { %5286 = vrcp.f32 %v697_v43  ;;  %v698_v54 = vadd.f32 1.0, %v5283_v50  ;;  %v962_v57 = vmax.f32 %v945_v49, 0.0  ;;  %v715_v60 = vunpack.c.0.s8 %v714_v14 }
 0x29d   :  { %5288 = vrcp.f32 %v696_v51  ;;  %987 = vmatprep.subr.mxu0 %v960_v53 }
 0x29e   :  { %5290 = vrcp.f32 %v698_v54  ;;  %1076 = vmatprep.subr.mxu1 %v962_v57  ;;  %988 = vmatpush1.msra.mxu0 %v959_v56  ;;  %v5743_v20 = vsub.s32 %v715_v60, %v5496_v5 }
 0x29f   :  { %1077 = vmatpush1.msra.mxu1 %v961_v62  ;;  %989 = vmatprep.subr.mxu0 %v956_v61  ;;  %v5099_v61 = vld [vmem:[%s6519_s0 + $0x10] sm:$0xff] }
 0x2a0   :  { %1078 = vmatprep.subr.mxu1 %v958_v7  ;;  %990 = vmatpush1.msra.mxu0 %v955_v1  ;;  %v1357_v3 = vcombine.high %v5099_v61, %v5099_v61 }
 0x2a1   :  { %1079 = vmatpush1.msra.mxu1 %v957_v10  ;;  %991 = vmatprep.subr.mxu0 %v952_v9 }
 0x2a2   :  { %1080 = vmatprep.subr.mxu1 %v954_v13  ;;  %992 = vmatpush1.msra.mxu0 %v951_v11 }
 0x2a3   :  { %1081 = vmatpush1.msra.mxu1 %v953_v18  ;;  %993 = vmatprep.subr.mxu0 %v948_v15 }
 0x2a4   :  { %1082 = vmatprep.subr.mxu1 %v950_v34  ;;  %994 = vmatpush1.msra.mxu0 %v947_v0  ;;  %v1364_v0 = vrot.slane %v5099_v61, %v5507_v12 }
 0x2a5   :  { %1083 = vmatpush1.msra.mxu1 %v949_v30  ;;  %5085 = vmatmul.mubr.msk.f32.vlgmr.msra.gmra.mxu0 %vm322_vm2, %v5604_v21 }
 0x2a6   :  { %5089 = vmatmul.mubr.msk.f32.vlgmr.msra.gmra.mxu1 %vm322_vm2, %v5604_v21  ;;  %1033 = vmatprep.mubr.f32.mxu0 %v5445_v6 }
 0x2a7   :  { %1122 = vmatprep.mubr.f32.mxu1 %v5445_v6 }
 0x2a8   :  { %v5285_v16 = vpop.eup %5284 }
 0x2a9   :  { %v5287_v17 = vpop.eup %5286  ;;  %5086 = vmatmul.mubr.msk.f32.gmra.mxu0 %vm322_vm2, %v5615_v23 }
 0x2aa   :  { %v5289_v32 = vpop.eup %5288  ;;  %5090 = vmatmul.mubr.msk.f32.gmra.mxu1 %vm322_vm2, %v5615_v23  ;;  %1039 = vmatprep.mubr.f32.mxu0 %v5445_v6 }
 0x2ab   :  { %v5291_v33 = vpop.eup %5290  ;;  %v711_v31 = vcombine.low %v5285_v16, %v5289_v32  ;;  %1128 = vmatprep.mubr.f32.mxu1 %v5445_v6 }
 0x2ac   :  { %v712_v35 = vcombine.low %v5287_v17, %v5291_v33 }
 0x2ad   :  { %v719_v37 = vrot.slane %v711_v31, %v5743_v20  ;;  %5087 = vmatmul.mubr.msk.f32.gmra.mxu0 %vm322_vm2, %v5626_v24 }
 0x2ae   :  { %v726_v5 = vrot.slane %v712_v35, %v5743_v20  ;;  %5091 = vmatmul.mubr.msk.f32.gmra.mxu1 %vm322_vm2, %v5626_v24  ;;  %1045 = vmatprep.mubr.f32.mxu0 %v5445_v6 }
 0x2af   :  { %1134 = vmatprep.mubr.f32.mxu1 %v5445_v6 }
 0x2b0   :  { %v727_v28 = vcombine.low %v719_v37, %v726_v5 }
 0x2b1   :  { %5088 = vmatmul.mubr.msk.f32.gmra.mxu0 %vm322_vm2, %v5637_v26 }
 0x2b2   :  { %5092 = vmatmul.mubr.msk.f32.gmra.mxu1 %vm322_vm2, %v5637_v26  ;;  %1221 = vmatprep.mubr.f32.mxu0 %v5445_v6  ;;  %v734_v40 = vrot.slane %v727_v28, %v5743_v20 }
 0x2b3   :  { %1292 = vmatprep.mubr.f32.mxu1 %v5445_v6 }
 0x2b4   :  { %740 = vst.msk [vmem:[#allocation3] sm:$0xf] %vm5762_vm3, %v734_v40 }
 0x365   :  { %v1029_v42 = vpop.f32.mrf.mxu0 }
 0x366   :  { %v1118_v43 = vpop.f32.mrf.mxu1  ;;  %v1030_v35 = vadd.f32 %v1029_v42, %v5666_v4 }
 0x367   :  { %v1031_v47 = vpop.f32.mrf.mxu0  ;;  %v1119_v40 = vadd.f32 %v1118_v43, %v5666_v4 }
 0x368   :  { %v1120_v48 = vpop.f32.mrf.mxu1  ;;  %v1032_v17 = vadd.f32 %v1031_v47, %v5666_v4  ;;  %v1371_v47 = vrot.slane %v1357_v3, %v5507_v12 }
 0x369   :  { %v1035_v2 = vpop.f32.mrf.mxu0  ;;  %v1121_v37 = vadd.f32 %v1120_v48, %v5666_v4  ;;  %v1141_v48 = vmax.f32 %v1030_v35, 0.0  ;;  %v1143_v43 = vmax.f32 %v1119_v40, 0.0 }
 0x36a   :  { %v1124_v49 = vpop.f32.mrf.mxu1  ;;  %v1036_v34 = vadd.f32 %v1035_v2, %v5658_v58 }
 0x36b   :  { %v1037_v50 = vpop.f32.mrf.mxu0  ;;  %v1125_v32 = vadd.f32 %v1124_v49, %v5658_v58 }
 0x36c   :  { %v1126_v51 = vpop.f32.mrf.mxu1  ;;  %v1038_v14 = vadd.f32 %v1037_v50, %v5658_v58  ;;  %v1145_v49 = vmax.f32 %v1036_v34, 0.0 }
 0x36d   :  { %v1041_v52 = vpop.f32.mrf.mxu0  ;;  %v1127_v30 = vadd.f32 %v1126_v51, %v5658_v58  ;;  %v1147_v42 = vmax.f32 %v1125_v32, 0.0 }
 0x36e   :  { %v1130_v53 = vpop.f32.mrf.mxu1  ;;  %v1042_v10 = vadd.f32 %v1041_v52, %v5650_v45  ;;  %v1146_v2 = vmax.f32 %v1038_v14, 0.0  ;;  %v1142_v52 = vmax.f32 %v1032_v17, 0.0 }
 0x36f   :  { %v1043_v54 = vpop.f32.mrf.mxu0  ;;  %v1131_v15 = vadd.f32 %v1130_v53, %v5650_v45  ;;  %v1148_v51 = vmax.f32 %v1127_v30, 0.0  ;;  %v1144_v53 = vmax.f32 %v1121_v37, 0.0 }
 0x370   :  { %v1132_v56 = vpop.f32.mrf.mxu1  ;;  %v1044_v1 = vadd.f32 %v1043_v54, %v5650_v45  ;;  %v1149_v5 = vmax.f32 %v1042_v10, 0.0  ;;  %v1372_v54 = vcombine.high %v1364_v0, %v1364_v0 }
 0x371   :  { %v1047_v57 = vpop.f32.mrf.mxu0  ;;  %v1133_v11 = vadd.f32 %v1132_v56, %v5650_v45  ;;  %v1151_v50 = vmax.f32 %v1131_v15, 0.0  ;;  %v1373_v56 = vcombine.high %v1371_v47, %v1371_v47 }
 0x372   :  { %v1136_v59 = vpop.f32.mrf.mxu1  ;;  %v1048_v62 = vadd.f32 %v1047_v57, %v5645_v39  ;;  %v1150_v33 = vmax.f32 %v1044_v1, 0.0 }
 0x373   :  { %v1049_v63 = vpop.f32.mrf.mxu0  ;;  %v1137_v7 = vadd.f32 %v1136_v59, %v5645_v39  ;;  %v1152_v28 = vmax.f32 %v1133_v11, 0.0 }
 0x374   :  { %v1050_v8 = vadd.f32 %v1049_v63, %v5645_v39  ;;  %v1138_v9 = vpop.f32.mrf.mxu1  ;;  %v1153_v60 = vmax.f32 %v1048_v62, 0.0 }
 0x375   :  { %v1139_v13 = vadd.f32 %v1138_v9, %v5645_v39  ;;  %v1155_v31 = vmax.f32 %v1137_v7, 0.0 }
 0x376   :  { %v1154_v18 = vmax.f32 %v1050_v8, 0.0 }
 0x377   :  { %v1156_v16 = vmax.f32 %v1139_v13, 0.0 }
 0x378   :  { %1181 = vmatprep.subr.mxu0 %v1154_v18 }
 0x379   :  { %1252 = vmatprep.subr.mxu1 %v1156_v16  ;;  %1182 = vmatpush1.msra.mxu0 %v1153_v60 }
 0x37a   :  { %1253 = vmatpush1.msra.mxu1 %v1155_v31  ;;  %1183 = vmatprep.subr.mxu0 %v1150_v33 }
 0x37b   :  { %1254 = vmatprep.subr.mxu1 %v1152_v28  ;;  %1184 = vmatpush1.msra.mxu0 %v1149_v5 }
 0x37c   :  { %1255 = vmatpush1.msra.mxu1 %v1151_v50  ;;  %1185 = vmatprep.subr.mxu0 %v1146_v2 }
 0x37d   :  { %1256 = vmatprep.subr.mxu1 %v1148_v51  ;;  %1186 = vmatpush1.msra.mxu0 %v1145_v49 }
 0x37e   :  { %1257 = vmatpush1.msra.mxu1 %v1147_v42  ;;  %1187 = vmatprep.subr.mxu0 %v1142_v52 }
 0x37f   :  { %1258 = vmatprep.subr.mxu1 %v1144_v53  ;;  %1188 = vmatpush1.msra.mxu0 %v1141_v48 }
 0x380   :  { %1259 = vmatpush1.msra.mxu1 %v1143_v43  ;;  %5093 = vmatmul.mubr.msk.f32.vlgmr.msra.gmra.mxu0 %vm322_vm2, %v5677_v29 }
 0x381   :  { %5094 = vmatmul.mubr.msk.f32.vlgmr.msra.gmra.mxu1 %vm322_vm2, %v5677_v29  ;;  %5100 = vmatprep.subr.msk.mxu0 %vm99_vm0, %v1372_v54 }
 0x382   :  { %5106 = vmatprep.subr.msk.mxu1 %vm99_vm0, %v1373_v56  ;;  %5101 = vmatpush1.msk.msra.mxu0 %vm99_vm0, %v1364_v0 }
 0x383   :  { %1446 = vmatprep.mubr.f32.mxu0 %v5445_v6  ;;  %5107 = vmatpush1.msk.msra.mxu1 %vm99_vm0, %v1371_v47 }
 0x384   :  { %1535 = vmatprep.mubr.f32.mxu1 %v5445_v6  ;;  %5102 = vmatmul.mubr.msk.f32.vlgmr.msra.gmra.mxu0 %vm86_vm1, %v5520_v19 }
 0x385   :  { %5108 = vmatmul.mubr.msk.f32.vlgmr.msra.gmra.mxu1 %vm86_vm1, %v5520_v19  ;;  %1452 = vmatprep.mubr.f32.mxu0 %v5445_v6 }
 0x386   :  { %1541 = vmatprep.mubr.f32.mxu1 %v5445_v6 }
 0x388   :  { %5103 = vmatmul.mubr.msk.f32.gmra.mxu0 %vm86_vm1, %v5541_v22 }
 0x389   :  { %5109 = vmatmul.mubr.msk.f32.gmra.mxu1 %vm86_vm1, %v5541_v22  ;;  %1458 = vmatprep.mubr.f32.mxu0 %v5445_v6 }
 0x38a   :  { %1547 = vmatprep.mubr.f32.mxu1 %v5445_v6 }
 0x38c   :  { %5104 = vmatmul.mubr.msk.f32.gmra.mxu0 %vm86_vm1, %v5558_v25 }
 0x38d   :  { %5110 = vmatmul.mubr.msk.f32.gmra.mxu1 %vm86_vm1, %v5558_v25  ;;  %1464 = vmatprep.mubr.f32.mxu0 %v5445_v6 }
 0x38e   :  { %1553 = vmatprep.mubr.f32.mxu1 %v5445_v6 }
 0x390   :  { %5105 = vmatmul.mubr.msk.f32.gmra.mxu0 %vm86_vm1, %v5569_v27 }
 0x391   :  { %5111 = vmatmul.mubr.msk.f32.gmra.mxu1 %vm86_vm1, %v5569_v27  ;;  %1640 = vmatprep.mubr.f32.mxu0 %v5445_v6 }
 0x392   :  { %1729 = vmatprep.mubr.f32.mxu1 %v5445_v6 }
 0x440   :  { %v1223_v19 = vpop.f32.mrf.mxu0 }
 0x441   :  { %v1224_v22 = vadd.f32 %v1223_v19, %v5714_v46  ;;  %v1294_v57 = vpop.f32.mrf.mxu1 }
 0x442   :  { %v1295_v25 = vadd.f32 %v1294_v57, %v5714_v46  ;;  %v1225_v59 = vpop.f32.mrf.mxu0 }
 0x443   :  { %v5095_v61 = vmul.f32 -1.442695, %v1224_v22  ;;  %v1226_v62 = vadd.f32 %v1225_v59, %v5714_v46  ;;  %v1296_v63 = vpop.f32.mrf.mxu1 }
 0x444   :  { %v5097_v1 = vmul.f32 -1.442695, %v1295_v25  ;;  %v1297_v7 = vadd.f32 %v1296_v63, %v5714_v46  ;;  %v1448_v8 = vpop.f32.mrf.mxu0 }
 0x445   :  { %5292 = vpow2.f32 %v5095_v61  ;;  %v5096_v27 = vmul.f32 -1.442695, %v1226_v62  ;;  %v1537_v9 = vpop.f32.mrf.mxu1  ;;  %v1449_v17 = vadd.f32 %v1448_v8, %v5591_v55 }
 0x446   :  { %5294 = vpow2.f32 %v5097_v1  ;;  %v5098_v10 = vmul.f32 -1.442695, %v1297_v7  ;;  %v1450_v11 = vpop.f32.mrf.mxu0 }
 0x447   :  { %5296 = vpow2.f32 %v5096_v27  ;;  %v1539_v13 = vpop.f32.mrf.mxu1  ;;  %v1451_v32 = vadd.f32 %v1450_v11, %v5591_v55 }
 0x448   :  { %5298 = vpow2.f32 %v5098_v10  ;;  %v1454_v3 = vpop.f32.mrf.mxu0  ;;  %v1540_v7 = vadd.f32 %v1539_v13, %v5591_v55  ;;  %v1538_v10 = vadd.f32 %v1537_v9, %v5591_v55 }
 0x449   :  { %v1543_v14 = vpop.f32.mrf.mxu1  ;;  %v1455_v35 = vadd.f32 %v1454_v3, %v5579_v41 }
 0x44a   :  { %v1456_v15 = vpop.f32.mrf.mxu0  ;;  %v1544_v62 = vadd.f32 %v1543_v14, %v5579_v41  ;;  %v1561_v14 = vmax.f32 %v1451_v32, 0.0  ;;  %v1563_v13 = vmax.f32 %v1540_v7, 0.0 }
 0x44b   :  { %v1545_v18 = vpop.f32.mrf.mxu1  ;;  %v1457_v37 = vadd.f32 %v1456_v15, %v5579_v41  ;;  %v1564_v15 = vmax.f32 %v1455_v35, 0.0 }
 0x44c   :  { %v1460_v0 = vpop.f32.mrf.mxu0  ;;  %v1546_v5 = vadd.f32 %v1545_v18, %v5579_v41 }
 0x44d   :  { %v1549_v34 = vpop.f32.mrf.mxu1  ;;  %v1461_v53 = vadd.f32 %v1460_v0, %v5581_v44  ;;  %v1565_v11 = vmax.f32 %v1457_v37, 0.0  ;;  %v1566_v0 = vmax.f32 %v1544_v62, 0.0 }
 0x44e   :  { %v1462_v30 = vpop.f32.mrf.mxu0  ;;  %v1550_v22 = vadd.f32 %v1549_v34, %v5581_v44  ;;  %v1567_v18 = vmax.f32 %v1546_v5, 0.0  ;;  %v1560_v34 = vmax.f32 %v1449_v17, 0.0 }
 0x44f   :  { %v1551_v60 = vpop.f32.mrf.mxu1  ;;  %v1463_v47 = vadd.f32 %v1462_v30, %v5581_v44  ;;  %v1568_v8 = vmax.f32 %v1461_v53, 0.0  ;;  %v1562_v30 = vmax.f32 %v1538_v10, 0.0  ;;  %v5126_v53 = vld [vmem:[%s6519_s0 + $0x18] sm:$0xff] }
 0x450   :  { %v1466_v16 = vpop.f32.mrf.mxu0  ;;  %v1552_v54 = vadd.f32 %v1551_v60, %v5581_v44  ;;  %v1570_v3 = vmax.f32 %v1550_v22, 0.0  ;;  %v1970_v62 = vcombine.high %v5126_v53, %v5126_v53 }
 0x451   :  { %v1555_v33 = vpop.f32.mrf.mxu1  ;;  %v1467_v28 = vadd.f32 %v1466_v16, %v5577_v36  ;;  %v1569_v63 = vmax.f32 %v1463_v47, 0.0 }
 0x452   :  { %v5293_v31 = vpop.eup %5292  ;;  %v1468_v40 = vpop.f32.mrf.mxu0  ;;  %v1556_v49 = vadd.f32 %v1555_v33, %v5577_v36  ;;  %v1571_v27 = vmax.f32 %v1552_v54, 0.0 }
 0x453   :  { %v5295_v2 = vpop.eup %5294  ;;  %v1311_v50 = vadd.f32 1.0, %v5293_v31  ;;  %v1469_v51 = vadd.f32 %v1468_v40, %v5577_v36  ;;  %v1557_v52 = vpop.f32.mrf.mxu1  ;;  %v1572_v59 = vmax.f32 %v1467_v28, 0.0 }
 0x454   :  { %v5297_v42 = vpop.eup %5296  ;;  %v1313_v48 = vadd.f32 1.0, %v5295_v2  ;;  %v1558_v43 = vadd.f32 %v1557_v52, %v5577_v36  ;;  %v1574_v1 = vmax.f32 %v1556_v49, 0.0 }
 0x455   :  { %v5299_v56 = vpop.eup %5298  ;;  %5300 = vrcp.f32 %v1311_v50  ;;  %v1312_v19 = vadd.f32 1.0, %v5297_v42  ;;  %v1573_v57 = vmax.f32 %v1469_v51, 0.0 }
 0x456   :  { %5302 = vrcp.f32 %v1313_v48  ;;  %v1314_v25 = vadd.f32 1.0, %v5299_v56  ;;  %v1575_v61 = vmax.f32 %v1558_v43, 0.0 }
 0x457   :  { %5304 = vrcp.f32 %v1312_v19  ;;  %1600 = vmatprep.subr.mxu0 %v1573_v57 }
 0x458   :  { %5306 = vrcp.f32 %v1314_v25  ;;  %1689 = vmatprep.subr.mxu1 %v1575_v61  ;;  %1601 = vmatpush1.msra.mxu0 %v1572_v59 }
 0x459   :  { %1690 = vmatpush1.msra.mxu1 %v1574_v1  ;;  %1602 = vmatprep.subr.mxu0 %v1569_v63 }
 0x45a   :  { %1691 = vmatprep.subr.mxu1 %v1571_v27  ;;  %1603 = vmatpush1.msra.mxu0 %v1568_v8  ;;  %v1977_v8 = vrot.slane %v5126_v53, %v5507_v12 }
 0x45b   :  { %1692 = vmatpush1.msra.mxu1 %v1570_v3  ;;  %1604 = vmatprep.subr.mxu0 %v1565_v11 }
 0x45c   :  { %1693 = vmatprep.subr.mxu1 %v1567_v18  ;;  %1605 = vmatpush1.msra.mxu0 %v1564_v15 }
 0x45d   :  { %1694 = vmatpush1.msra.mxu1 %v1566_v0  ;;  %1606 = vmatprep.subr.mxu0 %v1561_v14 }
 0x45e   :  { %1695 = vmatprep.subr.mxu1 %v1563_v13  ;;  %1607 = vmatpush1.msra.mxu0 %v1560_v34 }
 0x45f   :  { %1696 = vmatpush1.msra.mxu1 %v1562_v30  ;;  %5112 = vmatmul.mubr.msk.f32.vlgmr.msra.gmra.mxu0 %vm322_vm2, %v5604_v21 }
 0x460   :  { %5116 = vmatmul.mubr.msk.f32.vlgmr.msra.gmra.mxu1 %vm322_vm2, %v5604_v21  ;;  %1646 = vmatprep.mubr.f32.mxu0 %v5445_v6 }
 0x461   :  { %1735 = vmatprep.mubr.f32.mxu1 %v5445_v6 }
 0x462   :  { %v5301_v9 = vpop.eup %5300 }
 0x463   :  { %v5303_v60 = vpop.eup %5302  ;;  %5113 = vmatmul.mubr.msk.f32.gmra.mxu0 %vm322_vm2, %v5615_v23 }
 0x464   :  { %v5305_v16 = vpop.eup %5304  ;;  %5117 = vmatmul.mubr.msk.f32.gmra.mxu1 %vm322_vm2, %v5615_v23  ;;  %1652 = vmatprep.mubr.f32.mxu0 %v5445_v6 }
 0x465   :  { %v5307_v17 = vpop.eup %5306  ;;  %v1327_v32 = vcombine.low %v5301_v9, %v5305_v16  ;;  %1741 = vmatprep.mubr.f32.mxu1 %v5445_v6 }
 0x466   :  { %v1328_v21 = vcombine.low %v5303_v60, %v5307_v17 }
 0x467   :  { %v1335_v33 = vrot.slane %v1327_v32, %v5743_v20  ;;  %5114 = vmatmul.mubr.msk.f32.gmra.mxu0 %vm322_vm2, %v5626_v24  ;;  %v1984_v32 = vrot.slane %v1970_v62, %v5507_v12 }
 0x468   :  { %v1342_v31 = vrot.slane %v1328_v21, %v5743_v20  ;;  %5118 = vmatmul.mubr.msk.f32.gmra.mxu1 %vm322_vm2, %v5626_v24  ;;  %1658 = vmatprep.mubr.f32.mxu0 %v5445_v6 }
 0x469   :  { %1747 = vmatprep.mubr.f32.mxu1 %v5445_v6 }
 0x46a   :  { %v1343_v23 = vcombine.low %v1335_v33, %v1342_v31 }
 0x46b   :  { %5115 = vmatmul.mubr.msk.f32.gmra.mxu0 %vm322_vm2, %v5637_v26 }
 0x46c   :  { %v1350_v35 = vrot.slane %v1343_v23, %v5743_v20  ;;  %5119 = vmatmul.mubr.msk.f32.gmra.mxu1 %vm322_vm2, %v5637_v26  ;;  %1834 = vmatprep.mubr.f32.mxu0 %v5445_v6 }
 0x46d   :  { %1905 = vmatprep.mubr.f32.mxu1 %v5445_v6 }
 0x46e   :  { %1353 = vst.msk [vmem:[#allocation3 + $0x4] sm:$0xf] %vm5762_vm3, %v1350_v35 }
 0x51f   :  { %v1642_v24 = vpop.f32.mrf.mxu0 }
 0x520   :  { %v1731_v37 = vpop.f32.mrf.mxu1  ;;  %v1643_v34 = vadd.f32 %v1642_v24, %v5666_v4 }
 0x521   :  { %v1644_v5 = vpop.f32.mrf.mxu0  ;;  %v1732_v60 = vadd.f32 %v1731_v37, %v5666_v4 }
 0x522   :  { %v1733_v28 = vpop.f32.mrf.mxu1  ;;  %v1645_v15 = vadd.f32 %v1644_v5, %v5666_v4  ;;  %v1754_v35 = vmax.f32 %v1643_v34, 0.0  ;;  %v1985_v5 = vcombine.high %v1977_v8, %v1977_v8 }
 0x523   :  { %v1648_v40 = vpop.f32.mrf.mxu0  ;;  %v1734_v13 = vadd.f32 %v1733_v28, %v5666_v4  ;;  %v1756_v37 = vmax.f32 %v1732_v60, 0.0  ;;  %v1986_v28 = vcombine.high %v1984_v32, %v1984_v32 }
 0x524   :  { %v1737_v2 = vpop.f32.mrf.mxu1  ;;  %v1649_v27 = vadd.f32 %v1648_v40, %v5658_v58  ;;  %v1755_v31 = vmax.f32 %v1645_v15, 0.0  ;;  %v5911_v40 = vld [vmem:[%s6520_s1] sm:$0xff] }
 0x525   :  { %v1650_v50 = vpop.f32.mrf.mxu0  ;;  %v1738_v18 = vadd.f32 %v1737_v2, %v5658_v58  ;;  %v1757_v24 = vmax.f32 %v1734_v13, 0.0  ;;  %v5933_v2 = vld [vmem:[%s6520_s1 + $0x10] sm:$0xff] }
 0x526   :  { %v1739_v47 = vpop.f32.mrf.mxu1  ;;  %v1651_v63 = vadd.f32 %v1650_v50, %v5658_v58  ;;  %v1758_v21 = vmax.f32 %v1649_v27, 0.0  ;;  %v5944_v50 = vld [vmem:[%s6520_s1 + $0x18] sm:$0xff] }
 0x527   :  { %v1654_v49 = vpop.f32.mrf.mxu0  ;;  %v1740_v10 = vadd.f32 %v1739_v47, %v5658_v58  ;;  %v1760_v23 = vmax.f32 %v1738_v18, 0.0 }
 0x528   :  { %v1743_v51 = vpop.f32.mrf.mxu1  ;;  %v1655_v25 = vadd.f32 %v1654_v49, %v5650_v45  ;;  %v1759_v16 = vmax.f32 %v1651_v63, 0.0 }
 0x529   :  { %v1656_v52 = vpop.f32.mrf.mxu0  ;;  %v1744_v1 = vadd.f32 %v1743_v51, %v5650_v45  ;;  %v1761_v33 = vmax.f32 %v1740_v10, 0.0 }
 0x52a   :  { %v1745_v42 = vpop.f32.mrf.mxu1  ;;  %v1657_v56 = vadd.f32 %v1656_v52, %v5650_v45  ;;  %v1762_v30 = vmax.f32 %v1655_v25, 0.0 }
 0x52b   :  { %v1660_v26 = vpop.f32.mrf.mxu0  ;;  %v1746_v59 = vadd.f32 %v1745_v42, %v5650_v45  ;;  %v1764_v17 = vmax.f32 %v1744_v1, 0.0 }
 0x52c   :  { %v1749_v48 = vpop.f32.mrf.mxu1  ;;  %v1661_v54 = vadd.f32 %v1660_v26, %v5645_v39  ;;  %v1763_v14 = vmax.f32 %v1657_v56, 0.0 }
 0x52d   :  { %v1662_v43 = vpop.f32.mrf.mxu0  ;;  %v1750_v19 = vadd.f32 %v1749_v48, %v5645_v39  ;;  %v1765_v9 = vmax.f32 %v1746_v59, 0.0 }
 0x52e   :  { %v1663_v22 = vadd.f32 %v1662_v43, %v5645_v39  ;;  %v1751_v57 = vpop.f32.mrf.mxu1  ;;  %v1766_v11 = vmax.f32 %v1661_v54, 0.0 }
 0x52f   :  { %v1752_v61 = vadd.f32 %v1751_v57, %v5645_v39  ;;  %v1768_v0 = vmax.f32 %v1750_v19, 0.0 }
 0x530   :  { %v1767_v7 = vmax.f32 %v1663_v22, 0.0 }
 0x531   :  { %v1769_v3 = vmax.f32 %v1752_v61, 0.0 }
 0x532   :  { %1794 = vmatprep.subr.mxu0 %v1767_v7 }
 0x533   :  { %1865 = vmatprep.subr.mxu1 %v1769_v3  ;;  %1795 = vmatpush1.msra.mxu0 %v1766_v11 }
 0x534   :  { %1866 = vmatpush1.msra.mxu1 %v1768_v0  ;;  %1796 = vmatprep.subr.mxu0 %v1763_v14 }
 0x535   :  { %1867 = vmatprep.subr.mxu1 %v1765_v9  ;;  %1797 = vmatpush1.msra.mxu0 %v1762_v30 }
 0x536   :  { %1868 = vmatpush1.msra.mxu1 %v1764_v17  ;;  %1798 = vmatprep.subr.mxu0 %v1759_v16 }
 0x537   :  { %1869 = vmatprep.subr.mxu1 %v1761_v33  ;;  %1799 = vmatpush1.msra.mxu0 %v1758_v21 }
 0x538   :  { %1870 = vmatpush1.msra.mxu1 %v1760_v23  ;;  %1800 = vmatprep.subr.mxu0 %v1755_v31 }
 0x539   :  { %1871 = vmatprep.subr.mxu1 %v1757_v24  ;;  %1801 = vmatpush1.msra.mxu0 %v1754_v35 }
 0x53a   :  { %1872 = vmatpush1.msra.mxu1 %v1756_v37  ;;  %5120 = vmatmul.mubr.msk.f32.vlgmr.msra.gmra.mxu0 %vm322_vm2, %v5677_v29 }
 0x53b   :  { %5121 = vmatmul.mubr.msk.f32.vlgmr.msra.gmra.mxu1 %vm322_vm2, %v5677_v29  ;;  %5127 = vmatprep.subr.msk.mxu0 %vm99_vm0, %v1985_v5  ;;  %v5922_v29 = vld [vmem:[%s6520_s1 + $0x8] sm:$0xff] }
 0x53c   :  { %5133 = vmatprep.subr.msk.mxu1 %vm99_vm0, %v1986_v28  ;;  %5128 = vmatpush1.msk.msra.mxu0 %vm99_vm0, %v1977_v8 }
 0x53d   :  { %2059 = vmatprep.mubr.f32.mxu0 %v5445_v6  ;;  %5134 = vmatpush1.msk.msra.mxu1 %vm99_vm0, %v1984_v32 }
 0x53e   :  { %2148 = vmatprep.mubr.f32.mxu1 %v5445_v6  ;;  %5129 = vmatmul.mubr.msk.f32.vlgmr.msra.gmra.mxu0 %vm86_vm1, %v5911_v40 }
 0x53f   :  { %5135 = vmatmul.mubr.msk.f32.vlgmr.msra.gmra.mxu1 %vm86_vm1, %v5911_v40  ;;  %2065 = vmatprep.mubr.f32.mxu0 %v5445_v6 }
 0x540   :  { %2154 = vmatprep.mubr.f32.mxu1 %v5445_v6 }
 0x542   :  { %5130 = vmatmul.mubr.msk.f32.gmra.mxu0 %vm86_vm1, %v5922_v29 }
 0x543   :  { %5136 = vmatmul.mubr.msk.f32.gmra.mxu1 %vm86_vm1, %v5922_v29  ;;  %2071 = vmatprep.mubr.f32.mxu0 %v5445_v6 }
 0x544   :  { %2160 = vmatprep.mubr.f32.mxu1 %v5445_v6 }
 0x546   :  { %5131 = vmatmul.mubr.msk.f32.gmra.mxu0 %vm86_vm1, %v5933_v2 }
 0x547   :  { %5137 = vmatmul.mubr.msk.f32.gmra.mxu1 %vm86_vm1, %v5933_v2  ;;  %2077 = vmatprep.mubr.f32.mxu0 %v5445_v6 }
 0x548   :  { %2166 = vmatprep.mubr.f32.mxu1 %v5445_v6 }
 0x54a   :  { %5132 = vmatmul.mubr.msk.f32.gmra.mxu0 %vm86_vm1, %v5944_v50 }
 0x54b   :  { %5138 = vmatmul.mubr.msk.f32.gmra.mxu1 %vm86_vm1, %v5944_v50  ;;  %2253 = vmatprep.mubr.f32.mxu0 %v5445_v6 }
 0x54c   :  { %2342 = vmatprep.mubr.f32.mxu1 %v5445_v6 }
 0x5fa   :  { %v1836_v47 = vpop.f32.mrf.mxu0 }
 0x5fb   :  { %v1837_v49 = vadd.f32 %v1836_v47, %v5714_v46  ;;  %v1907_v51 = vpop.f32.mrf.mxu1 }
 0x5fc   :  { %v1908_v52 = vadd.f32 %v1907_v51, %v5714_v46  ;;  %v1838_v42 = vpop.f32.mrf.mxu0 }
 0x5fd   :  { %v5122_v26 = vmul.f32 -1.442695, %v1837_v49  ;;  %v1839_v48 = vadd.f32 %v1838_v42, %v5714_v46  ;;  %v1909_v53 = vpop.f32.mrf.mxu1 }
 0x5fe   :  { %v5124_v54 = vmul.f32 -1.442695, %v1908_v52  ;;  %v1910_v43 = vadd.f32 %v1909_v53, %v5714_v46  ;;  %v2061_v56 = vpop.f32.mrf.mxu0 }
 0x5ff   :  { %5308 = vpow2.f32 %v5122_v26  ;;  %v5123_v19 = vmul.f32 -1.442695, %v1839_v48  ;;  %v2150_v22 = vpop.f32.mrf.mxu1  ;;  %v2062_v3 = vadd.f32 %v2061_v56, %v5591_v55 }
 0x600   :  { %5310 = vpow2.f32 %v5124_v54  ;;  %v5125_v57 = vmul.f32 -1.442695, %v1910_v43  ;;  %v2063_v25 = vpop.f32.mrf.mxu0 }
 0x601   :  { %5312 = vpow2.f32 %v5123_v19  ;;  %v2152_v59 = vpop.f32.mrf.mxu1  ;;  %v2064_v15 = vadd.f32 %v2063_v25, %v5591_v55  ;;  %v2151_v19 = vadd.f32 %v2150_v22, %v5591_v55  ;;  %v5975_v22 = vld [vmem:[%s6522_s3] sm:$0xff] }
 0x602   :  { %5314 = vpow2.f32 %v5125_v57  ;;  %v2067_v61 = vpop.f32.mrf.mxu0  ;;  %v2153_v54 = vadd.f32 %v2152_v59, %v5591_v55 }
 0x603   :  { %v2156_v62 = vpop.f32.mrf.mxu1  ;;  %v2068_v0 = vadd.f32 %v2067_v61, %v5579_v41 }
 0x604   :  { %v2069_v63 = vpop.f32.mrf.mxu0  ;;  %v2157_v26 = vadd.f32 %v2156_v62, %v5579_v41  ;;  %v2174_v62 = vmax.f32 %v2064_v15, 0.0  ;;  %v2176_v59 = vmax.f32 %v2153_v54, 0.0 }
 0x605   :  { %v2158_v1 = vpop.f32.mrf.mxu1  ;;  %v2070_v34 = vadd.f32 %v2069_v63, %v5579_v41  ;;  %v2177_v61 = vmax.f32 %v2068_v0, 0.0 }
 0x606   :  { %v2073_v7 = vpop.f32.mrf.mxu0  ;;  %v2159_v13 = vadd.f32 %v2158_v1, %v5579_v41  ;;  %v2179_v1 = vmax.f32 %v2157_v26, 0.0 }
 0x607   :  { %v2162_v8 = vpop.f32.mrf.mxu1  ;;  %v2074_v35 = vadd.f32 %v2073_v7, %v5581_v44  ;;  %v2178_v57 = vmax.f32 %v2070_v34, 0.0  ;;  %v2173_v7 = vmax.f32 %v2062_v3, 0.0  ;;  %v5998_v34 = vld [vmem:[%s6522_s3 + $0x10] sm:$0xff] }
 0x608   :  { %v2075_v27 = vpop.f32.mrf.mxu0  ;;  %v2163_v47 = vadd.f32 %v2162_v8, %v5581_v44  ;;  %v2180_v63 = vmax.f32 %v2159_v13, 0.0  ;;  %v2175_v8 = vmax.f32 %v2151_v19, 0.0 }
 0x609   :  { %v2164_v10 = vpop.f32.mrf.mxu1  ;;  %v2076_v17 = vadd.f32 %v2075_v27, %v5581_v44  ;;  %v2181_v43 = vmax.f32 %v2074_v35, 0.0 }
 0x60a   :  { %v2079_v11 = vpop.f32.mrf.mxu0  ;;  %v2165_v24 = vadd.f32 %v2164_v10, %v5581_v44  ;;  %v2183_v25 = vmax.f32 %v2163_v47, 0.0 }
 0x60b   :  { %v2168_v18 = vpop.f32.mrf.mxu1  ;;  %v2080_v30 = vadd.f32 %v2079_v11, %v5577_v36  ;;  %v2182_v48 = vmax.f32 %v2076_v17, 0.0  ;;  %v5986_v11 = vld [vmem:[%s6522_s3 + $0x8] sm:$0xff] }
 0x60c   :  { %v5309_v14 = vpop.eup %5308  ;;  %v2081_v9 = vpop.f32.mrf.mxu0  ;;  %v2169_v32 = vadd.f32 %v2168_v18, %v5577_v36  ;;  %v2184_v56 = vmax.f32 %v2165_v24, 0.0 }
 0x60d   :  { %v5311_v60 = vpop.eup %5310  ;;  %v1924_v16 = vadd.f32 1.0, %v5309_v14  ;;  %v2082_v21 = vadd.f32 %v2081_v9, %v5577_v36  ;;  %v2170_v33 = vpop.f32.mrf.mxu1  ;;  %v2185_v52 = vmax.f32 %v2080_v30, 0.0  ;;  %v6010_v9 = vld [vmem:[%s6522_s3 + $0x18] sm:$0xff] }
 0x60e   :  { %v5313_v31 = vpop.eup %5312  ;;  %v1926_v23 = vadd.f32 1.0, %v5311_v60  ;;  %v2171_v5 = vadd.f32 %v2170_v33, %v5577_v36  ;;  %v2187_v53 = vmax.f32 %v2169_v32, 0.0 }
 0x60f   :  { %v5315_v37 = vpop.eup %5314  ;;  %5316 = vrcp.f32 %v1924_v16  ;;  %v1925_v28 = vadd.f32 1.0, %v5313_v31  ;;  %v2186_v49 = vmax.f32 %v2082_v21, 0.0 }
 0x610   :  { %5318 = vrcp.f32 %v1926_v23  ;;  %v1927_v51 = vadd.f32 1.0, %v5315_v37  ;;  %v2188_v42 = vmax.f32 %v2171_v5, 0.0 }
 0x611   :  { %5320 = vrcp.f32 %v1925_v28  ;;  %2213 = vmatprep.subr.mxu0 %v2186_v49 }
 0x612   :  { %5322 = vrcp.f32 %v1927_v51  ;;  %2302 = vmatprep.subr.mxu1 %v2188_v42  ;;  %2214 = vmatpush1.msra.mxu0 %v2185_v52  ;;  %v5153_v51 = vld [vmem:[%s6519_s0 + $0x20] sm:$0xff] }
 0x613   :  { %2303 = vmatpush1.msra.mxu1 %v2187_v53  ;;  %2215 = vmatprep.subr.mxu0 %v2182_v48 }
 0x614   :  { %2304 = vmatprep.subr.mxu1 %v2184_v56  ;;  %2216 = vmatpush1.msra.mxu0 %v2181_v43 }
 0x615   :  { %2305 = vmatpush1.msra.mxu1 %v2183_v25  ;;  %2217 = vmatprep.subr.mxu0 %v2178_v57  ;;  %v2583_v57 = vcombine.high %v5153_v51, %v5153_v51 }
 0x616   :  { %2306 = vmatprep.subr.mxu1 %v2180_v63  ;;  %2218 = vmatpush1.msra.mxu0 %v2177_v61 }
 0x617   :  { %2307 = vmatpush1.msra.mxu1 %v2179_v1  ;;  %2219 = vmatprep.subr.mxu0 %v2174_v62  ;;  %v2590_v62 = vrot.slane %v5153_v51, %v5507_v12 }
 0x618   :  { %2308 = vmatprep.subr.mxu1 %v2176_v59  ;;  %2220 = vmatpush1.msra.mxu0 %v2173_v7 }
 0x619   :  { %2309 = vmatpush1.msra.mxu1 %v2175_v8  ;;  %5139 = vmatmul.mubr.msk.f32.vlgmr.msra.gmra.mxu0 %vm322_vm2, %v5975_v22 }
 0x61a   :  { %5143 = vmatmul.mubr.msk.f32.vlgmr.msra.gmra.mxu1 %vm322_vm2, %v5975_v22  ;;  %2259 = vmatprep.mubr.f32.mxu0 %v5445_v6 }
 0x61b   :  { %2348 = vmatprep.mubr.f32.mxu1 %v5445_v6 }
 0x61c   :  { %v5317_v27 = vpop.eup %5316 }
 0x61d   :  { %v5319_v10 = vpop.eup %5318  ;;  %5140 = vmatmul.mubr.msk.f32.gmra.mxu0 %vm322_vm2, %v5986_v11 }
 0x61e   :  { %v5321_v3 = vpop.eup %5320  ;;  %5144 = vmatmul.mubr.msk.f32.gmra.mxu1 %vm322_vm2, %v5986_v11  ;;  %2265 = vmatprep.mubr.f32.mxu0 %v5445_v6 }
 0x61f   :  { %v5323_v15 = vpop.eup %5322  ;;  %v1940_v18 = vcombine.low %v5317_v27, %v5321_v3  ;;  %2354 = vmatprep.mubr.f32.mxu1 %v5445_v6 }
 0x620   :  { %v1941_v14 = vcombine.low %v5319_v10, %v5323_v15 }
 0x621   :  { %v1948_v0 = vrot.slane %v1940_v18, %v5743_v20  ;;  %5141 = vmatmul.mubr.msk.f32.gmra.mxu0 %vm322_vm2, %v5998_v34 }
 0x622   :  { %v1955_v13 = vrot.slane %v1941_v14, %v5743_v20  ;;  %5145 = vmatmul.mubr.msk.f32.gmra.mxu1 %vm322_vm2, %v5998_v34  ;;  %2271 = vmatprep.mubr.f32.mxu0 %v5445_v6 }
 0x623   :  { %2360 = vmatprep.mubr.f32.mxu1 %v5445_v6 }
 0x624   :  { %v1956_v30 = vcombine.low %v1948_v0, %v1955_v13 }
 0x625   :  { %5142 = vmatmul.mubr.msk.f32.gmra.mxu0 %vm322_vm2, %v6010_v9 }
 0x626   :  { %v1963_v60 = vrot.slane %v1956_v30, %v5743_v20  ;;  %5146 = vmatmul.mubr.msk.f32.gmra.mxu1 %vm322_vm2, %v6010_v9  ;;  %2447 = vmatprep.mubr.f32.mxu0 %v5445_v6 }
 0x627   :  { %2518 = vmatprep.mubr.f32.mxu1 %v5445_v6 }
 0x628   :  { %1966 = vst.msk [vmem:[#allocation3 + $0x8] sm:$0xf] %vm5762_vm3, %v1963_v60 }
 0x6d9   :  { %v2255_v16 = vpop.f32.mrf.mxu0 }
 0x6da   :  { %v2344_v17 = vpop.f32.mrf.mxu1  ;;  %v2256_v18 = vadd.f32 %v2255_v16, %v5666_v4 }
 0x6db   :  { %v2257_v32 = vpop.f32.mrf.mxu0  ;;  %v2345_v30 = vadd.f32 %v2344_v17, %v5666_v4 }
 0x6dc   :  { %v2346_v21 = vpop.f32.mrf.mxu1  ;;  %v2258_v27 = vadd.f32 %v2257_v32, %v5666_v4  ;;  %v2597_v32 = vrot.slane %v2583_v57, %v5507_v12 }
 0x6dd   :  { %v2261_v33 = vpop.f32.mrf.mxu0  ;;  %v2347_v14 = vadd.f32 %v2346_v21, %v5666_v4  ;;  %v2367_v21 = vmax.f32 %v2256_v18, 0.0  ;;  %v2369_v17 = vmax.f32 %v2345_v30, 0.0 }
 0x6de   :  { %v2350_v31 = vpop.f32.mrf.mxu1  ;;  %v2262_v1 = vadd.f32 %v2261_v33, %v5658_v58 }
 0x6df   :  { %v2263_v23 = vpop.f32.mrf.mxu0  ;;  %v2351_v10 = vadd.f32 %v2350_v31, %v5658_v58 }
 0x6e0   :  { %v2352_v35 = vpop.f32.mrf.mxu1  ;;  %v2264_v25 = vadd.f32 %v2263_v23, %v5658_v58  ;;  %v2371_v31 = vmax.f32 %v2262_v1, 0.0 }
 0x6e1   :  { %v2267_v24 = vpop.f32.mrf.mxu0  ;;  %v2353_v7 = vadd.f32 %v2352_v35, %v5658_v58  ;;  %v2368_v35 = vmax.f32 %v2258_v27, 0.0  ;;  %v2373_v16 = vmax.f32 %v2351_v10, 0.0 }
 0x6e2   :  { %v2356_v5 = vpop.f32.mrf.mxu1  ;;  %v2268_v43 = vadd.f32 %v2267_v24, %v5650_v45  ;;  %v2372_v60 = vmax.f32 %v2264_v25, 0.0  ;;  %v2370_v24 = vmax.f32 %v2347_v14, 0.0 }
 0x6e3   :  { %v2269_v37 = vpop.f32.mrf.mxu0  ;;  %v2357_v61 = vadd.f32 %v2356_v5, %v5650_v45  ;;  %v2374_v23 = vmax.f32 %v2353_v7, 0.0  ;;  %v2598_v5 = vcombine.high %v2590_v62, %v2590_v62 }
 0x6e4   :  { %v2358_v28 = vpop.f32.mrf.mxu1  ;;  %v2270_v26 = vadd.f32 %v2269_v37, %v5650_v45  ;;  %v2375_v0 = vmax.f32 %v2268_v43, 0.0  ;;  %v2599_v37 = vcombine.high %v2597_v32, %v2597_v32 }
 0x6e5   :  { %v2273_v47 = vpop.f32.mrf.mxu0  ;;  %v2359_v56 = vadd.f32 %v2358_v28, %v5650_v45  ;;  %v2377_v33 = vmax.f32 %v2357_v61, 0.0  ;;  %v6045_v28 = vld [vmem:[%s6524_s5] sm:$0x1] }
 0x6e6   :  { %v2362_v49 = vpop.f32.mrf.mxu1  ;;  %v2274_v52 = vadd.f32 %v2273_v47, %v5645_v39  ;;  %v2376_v3 = vmax.f32 %v2270_v26, 0.0 }
 0x6e7   :  { %v2275_v42 = vpop.f32.mrf.mxu0  ;;  %v2363_v48 = vadd.f32 %v2362_v49, %v5645_v39  ;;  %v2378_v13 = vmax.f32 %v2359_v56, 0.0 }
 0x6e8   :  { %v2276_v53 = vadd.f32 %v2275_v42, %v5645_v39  ;;  %v2364_v54 = vpop.f32.mrf.mxu1  ;;  %v2379_v59 = vmax.f32 %v2274_v52, 0.0 }
 0x6e9   :  { %v2365_v19 = vadd.f32 %v2364_v54, %v5645_v39  ;;  %v2381_v15 = vmax.f32 %v2363_v48, 0.0 }
 0x6ea   :  { %v2380_v63 = vmax.f32 %v2276_v53, 0.0 }
 0x6eb   :  { %v2382_v8 = vmax.f32 %v2365_v19, 0.0 }
 0x6ec   :  { %2407 = vmatprep.subr.mxu0 %v2380_v63 }
 0x6ed   :  { %2478 = vmatprep.subr.mxu1 %v2382_v8  ;;  %2408 = vmatpush1.msra.mxu0 %v2379_v59 }
 0x6ee   :  { %2479 = vmatpush1.msra.mxu1 %v2381_v15  ;;  %2409 = vmatprep.subr.mxu0 %v2376_v3 }
 0x6ef   :  { %2480 = vmatprep.subr.mxu1 %v2378_v13  ;;  %2410 = vmatpush1.msra.mxu0 %v2375_v0 }
 0x6f0   :  { %2481 = vmatpush1.msra.mxu1 %v2377_v33  ;;  %2411 = vmatprep.subr.mxu0 %v2372_v60 }
 0x6f1   :  { %2482 = vmatprep.subr.mxu1 %v2374_v23  ;;  %2412 = vmatpush1.msra.mxu0 %v2371_v31 }
 0x6f2   :  { %2483 = vmatpush1.msra.mxu1 %v2373_v16  ;;  %2413 = vmatprep.subr.mxu0 %v2368_v35 }
 0x6f3   :  { %2484 = vmatprep.subr.mxu1 %v2370_v24  ;;  %2414 = vmatpush1.msra.mxu0 %v2367_v21 }
 0x6f4   :  { %2485 = vmatpush1.msra.mxu1 %v2369_v17  ;;  %5147 = vmatmul.mubr.msk.f32.vlgmr.msra.gmra.mxu0 %vm322_vm2, %v6045_v28 }
 0x6f5   :  { %5148 = vmatmul.mubr.msk.f32.vlgmr.msra.gmra.mxu1 %vm322_vm2, %v6045_v28  ;;  %5154 = vmatprep.subr.msk.mxu0 %vm99_vm0, %v2598_v5 }
 0x6f6   :  { %5160 = vmatprep.subr.msk.mxu1 %vm99_vm0, %v2599_v37  ;;  %5155 = vmatpush1.msk.msra.mxu0 %vm99_vm0, %v2590_v62 }
 0x6f7   :  { %2672 = vmatprep.mubr.f32.mxu0 %v5445_v6  ;;  %5161 = vmatpush1.msk.msra.mxu1 %vm99_vm0, %v2597_v32 }
 0x6f8   :  { %2761 = vmatprep.mubr.f32.mxu1 %v5445_v6  ;;  %5156 = vmatmul.mubr.msk.f32.vlgmr.msra.gmra.mxu0 %vm86_vm1, %v5911_v40 }
 0x6f9   :  { %5162 = vmatmul.mubr.msk.f32.vlgmr.msra.gmra.mxu1 %vm86_vm1, %v5911_v40  ;;  %2678 = vmatprep.mubr.f32.mxu0 %v5445_v6 }
 0x6fa   :  { %2767 = vmatprep.mubr.f32.mxu1 %v5445_v6 }
 0x6fc   :  { %5157 = vmatmul.mubr.msk.f32.gmra.mxu0 %vm86_vm1, %v5922_v29 }
 0x6fd   :  { %5163 = vmatmul.mubr.msk.f32.gmra.mxu1 %vm86_vm1, %v5922_v29  ;;  %2684 = vmatprep.mubr.f32.mxu0 %v5445_v6 }
 0x6fe   :  { %2773 = vmatprep.mubr.f32.mxu1 %v5445_v6 }
 0x700   :  { %5158 = vmatmul.mubr.msk.f32.gmra.mxu0 %vm86_vm1, %v5933_v2 }
 0x701   :  { %5164 = vmatmul.mubr.msk.f32.gmra.mxu1 %vm86_vm1, %v5933_v2  ;;  %2690 = vmatprep.mubr.f32.mxu0 %v5445_v6 }
 0x702   :  { %2779 = vmatprep.mubr.f32.mxu1 %v5445_v6 }
 0x704   :  { %5159 = vmatmul.mubr.msk.f32.gmra.mxu0 %vm86_vm1, %v5944_v50 }
 0x705   :  { %5165 = vmatmul.mubr.msk.f32.gmra.mxu1 %vm86_vm1, %v5944_v50  ;;  %2866 = vmatprep.mubr.f32.mxu0 %v5445_v6 }
 0x706   :  { %2955 = vmatprep.mubr.f32.mxu1 %v5445_v6 }
 0x7b4   :  { %v2449_v47 = vpop.f32.mrf.mxu0 }
 0x7b5   :  { %v2450_v49 = vadd.f32 %v2449_v47, %v5714_v46  ;;  %v2520_v51 = vpop.f32.mrf.mxu1 }
 0x7b6   :  { %v2521_v52 = vadd.f32 %v2520_v51, %v5714_v46  ;;  %v2451_v42 = vpop.f32.mrf.mxu0 }
 0x7b7   :  { %v5149_v26 = vmul.f32 -1.442695, %v2450_v49  ;;  %v2452_v48 = vadd.f32 %v2451_v42, %v5714_v46  ;;  %v2522_v53 = vpop.f32.mrf.mxu1 }
 0x7b8   :  { %v5151_v54 = vmul.f32 -1.442695, %v2521_v52  ;;  %v2523_v43 = vadd.f32 %v2522_v53, %v5714_v46  ;;  %v2674_v56 = vpop.f32.mrf.mxu0 }
 0x7b9   :  { %5324 = vpow2.f32 %v5149_v26  ;;  %v5150_v19 = vmul.f32 -1.442695, %v2452_v48  ;;  %v2763_v57 = vpop.f32.mrf.mxu1  ;;  %v2675_v18 = vadd.f32 %v2674_v56, %v5591_v55 }
 0x7ba   :  { %5326 = vpow2.f32 %v5151_v54  ;;  %v5152_v25 = vmul.f32 -1.442695, %v2523_v43  ;;  %v2676_v61 = vpop.f32.mrf.mxu0 }
 0x7bb   :  { %5328 = vpow2.f32 %v5150_v19  ;;  %v2765_v63 = vpop.f32.mrf.mxu1  ;;  %v2677_v14 = vadd.f32 %v2676_v61, %v5591_v55 }
 0x7bc   :  { %5330 = vpow2.f32 %v5152_v25  ;;  %v2680_v62 = vpop.f32.mrf.mxu0  ;;  %v2766_v61 = vadd.f32 %v2765_v63, %v5591_v55 }
 0x7bd   :  { %v2769_v1 = vpop.f32.mrf.mxu1  ;;  %v2681_v30 = vadd.f32 %v2680_v62, %v5579_v41 }
 0x7be   :  { %v2682_v7 = vpop.f32.mrf.mxu0  ;;  %v2770_v56 = vadd.f32 %v2769_v1, %v5579_v41  ;;  %v2787_v1 = vmax.f32 %v2677_v14, 0.0  ;;  %v2789_v63 = vmax.f32 %v2766_v61, 0.0 }
 0x7bf   :  { %v2771_v59 = vpop.f32.mrf.mxu1  ;;  %v2683_v60 = vadd.f32 %v2682_v7, %v5579_v41 }
 0x7c0   :  { %v2686_v8 = vpop.f32.mrf.mxu0  ;;  %v2772_v33 = vadd.f32 %v2771_v59, %v5579_v41  ;;  %v2764_v59 = vadd.f32 %v2763_v57, %v5591_v55 }
 0x7c1   :  { %v2775_v27 = vpop.f32.mrf.mxu1  ;;  %v2687_v47 = vadd.f32 %v2686_v8, %v5581_v44  ;;  %v2791_v8 = vmax.f32 %v2683_v60, 0.0 }
 0x7c2   :  { %v2688_v10 = vpop.f32.mrf.mxu0  ;;  %v2776_v26 = vadd.f32 %v2775_v27, %v5581_v44 }
 0x7c3   :  { %v2777_v3 = vpop.f32.mrf.mxu1  ;;  %v2689_v16 = vadd.f32 %v2688_v10, %v5581_v44  ;;  %v2794_v62 = vmax.f32 %v2687_v47, 0.0  ;;  %v2790_v10 = vmax.f32 %v2681_v30, 0.0 }
 0x7c4   :  { %v2692_v15 = vpop.f32.mrf.mxu0  ;;  %v2778_v49 = vadd.f32 %v2777_v3, %v5581_v44  ;;  %v2796_v27 = vmax.f32 %v2776_v26, 0.0  ;;  %v2793_v3 = vmax.f32 %v2772_v33, 0.0 }
 0x7c5   :  { %v2781_v0 = vpop.f32.mrf.mxu1  ;;  %v2693_v32 = vadd.f32 %v2692_v15, %v5577_v36  ;;  %v2795_v19 = vmax.f32 %v2689_v16, 0.0  ;;  %v2792_v15 = vmax.f32 %v2770_v56, 0.0 }
 0x7c6   :  { %v5325_v13 = vpop.eup %5324  ;;  %v2694_v31 = vpop.f32.mrf.mxu0  ;;  %v2782_v21 = vadd.f32 %v2781_v0, %v5577_v36  ;;  %v2797_v7 = vmax.f32 %v2778_v49, 0.0  ;;  %v2786_v0 = vmax.f32 %v2675_v18, 0.0 }
 0x7c7   :  { %v5327_v23 = vpop.eup %5326  ;;  %v2537_v35 = vadd.f32 1.0, %v5325_v13  ;;  %v2695_v24 = vadd.f32 %v2694_v31, %v5577_v36  ;;  %v2783_v5 = vpop.f32.mrf.mxu1  ;;  %v2798_v54 = vmax.f32 %v2693_v32, 0.0  ;;  %v2788_v13 = vmax.f32 %v2764_v59, 0.0 }
 0x7c8   :  { %v5329_v17 = vpop.eup %5328  ;;  %v2539_v37 = vadd.f32 1.0, %v5327_v23  ;;  %v2784_v51 = vadd.f32 %v2783_v5, %v5577_v36  ;;  %v2800_v25 = vmax.f32 %v2782_v21, 0.0 }
 0x7c9   :  { %v5331_v52 = vpop.eup %5330  ;;  %5332 = vrcp.f32 %v2537_v35  ;;  %v2538_v42 = vadd.f32 1.0, %v5329_v17  ;;  %v2799_v48 = vmax.f32 %v2695_v24, 0.0 }
 0x7ca   :  { %5334 = vrcp.f32 %v2539_v37  ;;  %v2540_v53 = vadd.f32 1.0, %v5331_v52  ;;  %v2801_v43 = vmax.f32 %v2784_v51, 0.0 }
 0x7cb   :  { %5336 = vrcp.f32 %v2538_v42  ;;  %2826 = vmatprep.subr.mxu0 %v2799_v48 }
 0x7cc   :  { %5338 = vrcp.f32 %v2540_v53  ;;  %2915 = vmatprep.subr.mxu1 %v2801_v43  ;;  %2827 = vmatpush1.msra.mxu0 %v2798_v54  ;;  %v5180_v54 = vld [vmem:[%s6519_s0 + $0x28] sm:$0xff] }
 0x7cd   :  { %2916 = vmatpush1.msra.mxu1 %v2800_v25  ;;  %2828 = vmatprep.subr.mxu0 %v2795_v19 }
 0x7ce   :  { %2917 = vmatprep.subr.mxu1 %v2797_v7  ;;  %2829 = vmatpush1.msra.mxu0 %v2794_v62 }
 0x7cf   :  { %2918 = vmatpush1.msra.mxu1 %v2796_v27  ;;  %2830 = vmatprep.subr.mxu0 %v2791_v8  ;;  %v3196_v27 = vcombine.high %v5180_v54, %v5180_v54 }
 0x7d0   :  { %2919 = vmatprep.subr.mxu1 %v2793_v3  ;;  %2831 = vmatpush1.msra.mxu0 %v2790_v10 }
 0x7d1   :  { %2920 = vmatpush1.msra.mxu1 %v2792_v15  ;;  %2832 = vmatprep.subr.mxu0 %v2787_v1  ;;  %v3203_v15 = vrot.slane %v5180_v54, %v5507_v12 }
 0x7d2   :  { %2921 = vmatprep.subr.mxu1 %v2789_v63  ;;  %2833 = vmatpush1.msra.mxu0 %v2786_v0 }
 0x7d3   :  { %2922 = vmatpush1.msra.mxu1 %v2788_v13  ;;  %5166 = vmatmul.mubr.msk.f32.vlgmr.msra.gmra.mxu0 %vm322_vm2, %v5975_v22 }
 0x7d4   :  { %5170 = vmatmul.mubr.msk.f32.vlgmr.msra.gmra.mxu1 %vm322_vm2, %v5975_v22  ;;  %2872 = vmatprep.mubr.f32.mxu0 %v5445_v6 }
 0x7d5   :  { %2961 = vmatprep.mubr.f32.mxu1 %v5445_v6 }
 0x7d6   :  { %v5333_v57 = vpop.eup %5332 }
 0x7d7   :  { %v5335_v18 = vpop.eup %5334  ;;  %5167 = vmatmul.mubr.msk.f32.gmra.mxu0 %vm322_vm2, %v5986_v11 }
 0x7d8   :  { %v5337_v14 = vpop.eup %5336  ;;  %5171 = vmatmul.mubr.msk.f32.gmra.mxu1 %vm322_vm2, %v5986_v11  ;;  %2878 = vmatprep.mubr.f32.mxu0 %v5445_v6 }
 0x7d9   :  { %v5339_v30 = vpop.eup %5338  ;;  %v2553_v60 = vcombine.low %v5333_v57, %v5337_v14  ;;  %2967 = vmatprep.mubr.f32.mxu1 %v5445_v6 }
 0x7da   :  { %v2554_v33 = vcombine.low %v5335_v18, %v5339_v30 }
 0x7db   :  { %v2561_v32 = vrot.slane %v2553_v60, %v5743_v20  ;;  %5168 = vmatmul.mubr.msk.f32.gmra.mxu0 %vm322_vm2, %v5998_v34 }
 0x7dc   :  { %v2568_v31 = vrot.slane %v2554_v33, %v5743_v20  ;;  %5172 = vmatmul.mubr.msk.f32.gmra.mxu1 %vm322_vm2, %v5998_v34  ;;  %2884 = vmatprep.mubr.f32.mxu0 %v5445_v6 }
 0x7dd   :  { %2973 = vmatprep.mubr.f32.mxu1 %v5445_v6 }
 0x7de   :  { %v2569_v23 = vcombine.low %v2561_v32, %v2568_v31 }
 0x7df   :  { %5169 = vmatmul.mubr.msk.f32.gmra.mxu0 %vm322_vm2, %v6010_v9 }
 0x7e0   :  { %v2576_v35 = vrot.slane %v2569_v23, %v5743_v20  ;;  %5173 = vmatmul.mubr.msk.f32.gmra.mxu1 %vm322_vm2, %v6010_v9  ;;  %3060 = vmatprep.mubr.f32.mxu0 %v5445_v6 }
 0x7e1   :  { %3131 = vmatprep.mubr.f32.mxu1 %v5445_v6 }
 0x7e2   :  { %2579 = vst.msk [vmem:[#allocation3 + $0xc] sm:$0xf] %vm5762_vm3, %v2576_v35 }
 0x893   :  { %v2868_v16 = vpop.f32.mrf.mxu0 }
 0x894   :  { %v2957_v21 = vpop.f32.mrf.mxu1  ;;  %v2869_v33 = vadd.f32 %v2868_v16, %v5666_v4 }
 0x895   :  { %v2870_v24 = vpop.f32.mrf.mxu0  ;;  %v2958_v35 = vadd.f32 %v2957_v21, %v5666_v4 }
 0x896   :  { %v2959_v5 = vpop.f32.mrf.mxu1  ;;  %v2871_v18 = vadd.f32 %v2870_v24, %v5666_v4  ;;  %v3210_v24 = vrot.slane %v3196_v27, %v5507_v12 }
 0x897   :  { %v2874_v17 = vpop.f32.mrf.mxu0  ;;  %v2960_v32 = vadd.f32 %v2959_v5, %v5666_v4  ;;  %v2980_v5 = vmax.f32 %v2869_v33, 0.0  ;;  %v2982_v21 = vmax.f32 %v2958_v35, 0.0 }
 0x898   :  { %v2963_v37 = vpop.f32.mrf.mxu1  ;;  %v2875_v0 = vadd.f32 %v2874_v17, %v5658_v58 }
 0x899   :  { %v2876_v47 = vpop.f32.mrf.mxu0  ;;  %v2964_v14 = vadd.f32 %v2963_v37, %v5658_v58 }
 0x89a   :  { %v2965_v49 = vpop.f32.mrf.mxu1  ;;  %v2877_v10 = vadd.f32 %v2876_v47, %v5658_v58  ;;  %v2984_v37 = vmax.f32 %v2875_v0, 0.0 }
 0x89b   :  { %v2880_v51 = vpop.f32.mrf.mxu0  ;;  %v2966_v63 = vadd.f32 %v2965_v49, %v5658_v58  ;;  %v2986_v16 = vmax.f32 %v2964_v14, 0.0 }
 0x89c   :  { %v2969_v52 = vpop.f32.mrf.mxu1  ;;  %v2881_v7 = vadd.f32 %v2880_v51, %v5650_v45  ;;  %v2985_v17 = vmax.f32 %v2877_v10, 0.0  ;;  %v2981_v51 = vmax.f32 %v2871_v18, 0.0 }
 0x89d   :  { %v2882_v42 = vpop.f32.mrf.mxu0  ;;  %v2970_v3 = vadd.f32 %v2969_v52, %v5650_v45  ;;  %v2987_v49 = vmax.f32 %v2966_v63, 0.0  ;;  %v2983_v52 = vmax.f32 %v2960_v32, 0.0 }
 0x89e   :  { %v2971_v26 = vpop.f32.mrf.mxu1  ;;  %v2883_v19 = vadd.f32 %v2882_v42, %v5650_v45  ;;  %v2988_v31 = vmax.f32 %v2881_v7, 0.0  ;;  %v3211_v42 = vcombine.high %v3203_v15, %v3203_v15 }
 0x89f   :  { %v2886_v48 = vpop.f32.mrf.mxu0  ;;  %v2972_v59 = vadd.f32 %v2971_v26, %v5650_v45  ;;  %v2990_v47 = vmax.f32 %v2970_v3, 0.0  ;;  %v3212_v26 = vcombine.high %v3210_v24, %v3210_v24 }
 0x8a0   :  { %v2975_v53 = vpop.f32.mrf.mxu1  ;;  %v2887_v43 = vadd.f32 %v2886_v48, %v5645_v39  ;;  %v2989_v30 = vmax.f32 %v2883_v19, 0.0 }
 0x8a1   :  { %v2888_v56 = vpop.f32.mrf.mxu0  ;;  %v2976_v25 = vadd.f32 %v2975_v53, %v5645_v39  ;;  %v2991_v23 = vmax.f32 %v2972_v59, 0.0 }
 0x8a2   :  { %v2889_v61 = vadd.f32 %v2888_v56, %v5645_v39  ;;  %v2977_v62 = vpop.f32.mrf.mxu1  ;;  %v2992_v13 = vmax.f32 %v2887_v43, 0.0 }
 0x8a3   :  { %v2978_v8 = vadd.f32 %v2977_v62, %v5645_v39  ;;  %v2994_v60 = vmax.f32 %v2976_v25, 0.0 }
 0x8a4   :  { %v2993_v1 = vmax.f32 %v2889_v61, 0.0 }
 0x8a5   :  { %v2995_v57 = vmax.f32 %v2978_v8, 0.0 }
 0x8a6   :  { %3020 = vmatprep.subr.mxu0 %v2993_v1 }
 0x8a7   :  { %3091 = vmatprep.subr.mxu1 %v2995_v57  ;;  %3021 = vmatpush1.msra.mxu0 %v2992_v13 }
 0x8a8   :  { %3092 = vmatpush1.msra.mxu1 %v2994_v60  ;;  %3022 = vmatprep.subr.mxu0 %v2989_v30 }
 0x8a9   :  { %3093 = vmatprep.subr.mxu1 %v2991_v23  ;;  %3023 = vmatpush1.msra.mxu0 %v2988_v31 }
 0x8aa   :  { %3094 = vmatpush1.msra.mxu1 %v2990_v47  ;;  %3024 = vmatprep.subr.mxu0 %v2985_v17 }
 0x8ab   :  { %3095 = vmatprep.subr.mxu1 %v2987_v49  ;;  %3025 = vmatpush1.msra.mxu0 %v2984_v37 }
 0x8ac   :  { %3096 = vmatpush1.msra.mxu1 %v2986_v16  ;;  %3026 = vmatprep.subr.mxu0 %v2981_v51 }
 0x8ad   :  { %3097 = vmatprep.subr.mxu1 %v2983_v52  ;;  %3027 = vmatpush1.msra.mxu0 %v2980_v5 }
 0x8ae   :  { %3098 = vmatpush1.msra.mxu1 %v2982_v21  ;;  %5174 = vmatmul.mubr.msk.f32.vlgmr.msra.gmra.mxu0 %vm322_vm2, %v6045_v28 }
 0x8af   :  { %5175 = vmatmul.mubr.msk.f32.vlgmr.msra.gmra.mxu1 %vm322_vm2, %v6045_v28  ;;  %5181 = vmatprep.subr.msk.mxu0 %vm99_vm0, %v3211_v42 }
 0x8b0   :  { %5187 = vmatprep.subr.msk.mxu1 %vm99_vm0, %v3212_v26  ;;  %5182 = vmatpush1.msk.msra.mxu0 %vm99_vm0, %v3203_v15 }
 0x8b1   :  { %3285 = vmatprep.mubr.f32.mxu0 %v5445_v6  ;;  %5188 = vmatpush1.msk.msra.mxu1 %vm99_vm0, %v3210_v24 }
 0x8b2   :  { %3374 = vmatprep.mubr.f32.mxu1 %v5445_v6  ;;  %5183 = vmatmul.mubr.msk.f32.vlgmr.msra.gmra.mxu0 %vm86_vm1, %v5911_v40 }
 0x8b3   :  { %5189 = vmatmul.mubr.msk.f32.vlgmr.msra.gmra.mxu1 %vm86_vm1, %v5911_v40  ;;  %3291 = vmatprep.mubr.f32.mxu0 %v5445_v6 }
 0x8b4   :  { %3380 = vmatprep.mubr.f32.mxu1 %v5445_v6 }
 0x8b6   :  { %5184 = vmatmul.mubr.msk.f32.gmra.mxu0 %vm86_vm1, %v5922_v29 }
 0x8b7   :  { %5190 = vmatmul.mubr.msk.f32.gmra.mxu1 %vm86_vm1, %v5922_v29  ;;  %3297 = vmatprep.mubr.f32.mxu0 %v5445_v6 }
 0x8b8   :  { %3386 = vmatprep.mubr.f32.mxu1 %v5445_v6 }
 0x8ba   :  { %5185 = vmatmul.mubr.msk.f32.gmra.mxu0 %vm86_vm1, %v5933_v2 }
 0x8bb   :  { %5191 = vmatmul.mubr.msk.f32.gmra.mxu1 %vm86_vm1, %v5933_v2  ;;  %3303 = vmatprep.mubr.f32.mxu0 %v5445_v6 }
 0x8bc   :  { %3392 = vmatprep.mubr.f32.mxu1 %v5445_v6 }
 0x8be   :  { %5186 = vmatmul.mubr.msk.f32.gmra.mxu0 %vm86_vm1, %v5944_v50 }
 0x8bf   :  { %5192 = vmatmul.mubr.msk.f32.gmra.mxu1 %vm86_vm1, %v5944_v50  ;;  %3479 = vmatprep.mubr.f32.mxu0 %v5445_v6 }
 0x8c0   :  { %3568 = vmatprep.mubr.f32.mxu1 %v5445_v6 }
 0x96e   :  { %v3062_v40 = vpop.f32.mrf.mxu0 }
 0x96f   :  { %v3063_v29 = vadd.f32 %v3062_v40, %v5714_v46  ;;  %v3133_v48 = vpop.f32.mrf.mxu1 }
 0x970   :  { %v3134_v2 = vadd.f32 %v3133_v48, %v5714_v46  ;;  %v3064_v53 = vpop.f32.mrf.mxu0 }
 0x971   :  { %v5176_v54 = vmul.f32 -1.442695, %v3063_v29  ;;  %v3065_v43 = vadd.f32 %v3064_v53, %v5714_v46  ;;  %v3135_v56 = vpop.f32.mrf.mxu1 }
 0x972   :  { %v5178_v19 = vmul.f32 -1.442695, %v3134_v2  ;;  %v3136_v25 = vadd.f32 %v3135_v56, %v5714_v46  ;;  %v3287_v61 = vpop.f32.mrf.mxu0 }
 0x973   :  { %5340 = vpow2.f32 %v5176_v54  ;;  %v5177_v50 = vmul.f32 -1.442695, %v3065_v43  ;;  %v3376_v62 = vpop.f32.mrf.mxu1  ;;  %v3288_v18 = vadd.f32 %v3287_v61, %v5591_v55 }
 0x974   :  { %5342 = vpow2.f32 %v5178_v19  ;;  %v5179_v7 = vmul.f32 -1.442695, %v3136_v25  ;;  %v3289_v59 = vpop.f32.mrf.mxu0 }
 0x975   :  { %5344 = vpow2.f32 %v5177_v50  ;;  %v3378_v8 = vpop.f32.mrf.mxu1  ;;  %v3290_v14 = vadd.f32 %v3289_v59, %v5591_v55 }
 0x976   :  { %5346 = vpow2.f32 %v5179_v7  ;;  %v3293_v27 = vpop.f32.mrf.mxu0  ;;  %v3379_v25 = vadd.f32 %v3378_v8, %v5591_v55  ;;  %v3377_v7 = vadd.f32 %v3376_v62, %v5591_v55 }
 0x977   :  { %v3382_v10 = vpop.f32.mrf.mxu1  ;;  %v3294_v33 = vadd.f32 %v3293_v27, %v5579_v41 }
 0x978   :  { %v3295_v3 = vpop.f32.mrf.mxu0  ;;  %v3383_v43 = vadd.f32 %v3382_v10, %v5579_v41  ;;  %v3400_v10 = vmax.f32 %v3290_v14, 0.0  ;;  %v3402_v8 = vmax.f32 %v3379_v25, 0.0 }
 0x979   :  { %v3384_v1 = vpop.f32.mrf.mxu1  ;;  %v3296_v32 = vadd.f32 %v3295_v3, %v5579_v41  ;;  %v3403_v3 = vmax.f32 %v3294_v33, 0.0 }
 0x97a   :  { %v3299_v15 = vpop.f32.mrf.mxu0  ;;  %v3385_v31 = vadd.f32 %v3384_v1, %v5579_v41 }
 0x97b   :  { %v3388_v0 = vpop.f32.mrf.mxu1  ;;  %v3300_v52 = vadd.f32 %v3299_v15, %v5581_v44  ;;  %v3404_v59 = vmax.f32 %v3296_v32, 0.0  ;;  %v3405_v15 = vmax.f32 %v3383_v43, 0.0 }
 0x97c   :  { %v3301_v63 = vpop.f32.mrf.mxu0  ;;  %v3389_v29 = vadd.f32 %v3388_v0, %v5581_v44  ;;  %v3406_v1 = vmax.f32 %v3385_v31, 0.0  ;;  %v3399_v0 = vmax.f32 %v3288_v18, 0.0 }
 0x97d   :  { %v3390_v13 = vpop.f32.mrf.mxu1  ;;  %v3302_v24 = vadd.f32 %v3301_v63, %v5581_v44  ;;  %v3407_v61 = vmax.f32 %v3300_v52, 0.0  ;;  %v3401_v63 = vmax.f32 %v3377_v7, 0.0  ;;  %v5207_v52 = vld [vmem:[%s6519_s0 + $0x30] sm:$0xff] }
 0x97e   :  { %v3305_v57 = vpop.f32.mrf.mxu0  ;;  %v3391_v42 = vadd.f32 %v3390_v13, %v5581_v44  ;;  %v3409_v27 = vmax.f32 %v3389_v29, 0.0  ;;  %v3809_v43 = vcombine.high %v5207_v52, %v5207_v52 }
 0x97f   :  { %v3394_v30 = vpop.f32.mrf.mxu1  ;;  %v3306_v23 = vadd.f32 %v3305_v57, %v5577_v36  ;;  %v3408_v56 = vmax.f32 %v3302_v24, 0.0 }
 0x980   :  { %v5341_v60 = vpop.eup %5340  ;;  %v3307_v35 = vpop.f32.mrf.mxu0  ;;  %v3395_v37 = vadd.f32 %v3394_v30, %v5577_v36  ;;  %v3410_v50 = vmax.f32 %v3391_v42, 0.0 }
 0x981   :  { %v5343_v17 = vpop.eup %5342  ;;  %v3150_v47 = vadd.f32 1.0, %v5341_v60  ;;  %v3308_v49 = vadd.f32 %v3307_v35, %v5577_v36  ;;  %v3396_v51 = vpop.f32.mrf.mxu1  ;;  %v3411_v53 = vmax.f32 %v3306_v23, 0.0 }
 0x982   :  { %v5345_v16 = vpop.eup %5344  ;;  %v3152_v5 = vadd.f32 1.0, %v5343_v17  ;;  %v3397_v21 = vadd.f32 %v3396_v51, %v5577_v36  ;;  %v3413_v19 = vmax.f32 %v3395_v37, 0.0 }
 0x983   :  { %v5347_v26 = vpop.eup %5346  ;;  %5348 = vrcp.f32 %v3150_v47  ;;  %v3151_v40 = vadd.f32 1.0, %v5345_v16  ;;  %v3412_v48 = vmax.f32 %v3308_v49, 0.0 }
 0x984   :  { %5350 = vrcp.f32 %v3152_v5  ;;  %v3153_v2 = vadd.f32 1.0, %v5347_v26  ;;  %v3414_v54 = vmax.f32 %v3397_v21, 0.0 }
 0x985   :  { %5352 = vrcp.f32 %v3151_v40  ;;  %3439 = vmatprep.subr.mxu0 %v3412_v48 }
 0x986   :  { %5354 = vrcp.f32 %v3153_v2  ;;  %3528 = vmatprep.subr.mxu1 %v3414_v54  ;;  %3440 = vmatpush1.msra.mxu0 %v3411_v53 }
 0x987   :  { %3529 = vmatpush1.msra.mxu1 %v3413_v19  ;;  %3441 = vmatprep.subr.mxu0 %v3408_v56 }
 0x988   :  { %3530 = vmatprep.subr.mxu1 %v3410_v50  ;;  %3442 = vmatpush1.msra.mxu0 %v3407_v61  ;;  %v3816_v61 = vrot.slane %v5207_v52, %v5507_v12 }
 0x989   :  { %3531 = vmatpush1.msra.mxu1 %v3409_v27  ;;  %3443 = vmatprep.subr.mxu0 %v3404_v59 }
 0x98a   :  { %3532 = vmatprep.subr.mxu1 %v3406_v1  ;;  %3444 = vmatpush1.msra.mxu0 %v3403_v3 }
 0x98b   :  { %3533 = vmatpush1.msra.mxu1 %v3405_v15  ;;  %3445 = vmatprep.subr.mxu0 %v3400_v10 }
 0x98c   :  { %3534 = vmatprep.subr.mxu1 %v3402_v8  ;;  %3446 = vmatpush1.msra.mxu0 %v3399_v0 }
 0x98d   :  { %3535 = vmatpush1.msra.mxu1 %v3401_v63  ;;  %5193 = vmatmul.mubr.msk.f32.vlgmr.msra.gmra.mxu0 %vm322_vm2, %v5975_v22 }
 0x98e   :  { %5197 = vmatmul.mubr.msk.f32.vlgmr.msra.gmra.mxu1 %vm322_vm2, %v5975_v22  ;;  %3485 = vmatprep.mubr.f32.mxu0 %v5445_v6 }
 0x98f   :  { %3574 = vmatprep.mubr.f32.mxu1 %v5445_v6 }
 0x990   :  { %v5349_v62 = vpop.eup %5348 }
 0x991   :  { %v5351_v13 = vpop.eup %5350  ;;  %5194 = vmatmul.mubr.msk.f32.gmra.mxu0 %vm322_vm2, %v5986_v11 }
 0x992   :  { %v5353_v57 = vpop.eup %5352  ;;  %5198 = vmatmul.mubr.msk.f32.gmra.mxu1 %vm322_vm2, %v5986_v11  ;;  %3491 = vmatprep.mubr.f32.mxu0 %v5445_v6 }
 0x993   :  { %v5355_v18 = vpop.eup %5354  ;;  %v3166_v14 = vcombine.low %v5349_v62, %v5353_v57  ;;  %3580 = vmatprep.mubr.f32.mxu1 %v5445_v6 }
 0x994   :  { %v3167_v22 = vcombine.low %v5351_v13, %v5355_v18 }
 0x995   :  { %v3174_v30 = vrot.slane %v3166_v14, %v5743_v20  ;;  %5195 = vmatmul.mubr.msk.f32.gmra.mxu0 %vm322_vm2, %v5998_v34  ;;  %v3823_v14 = vrot.slane %v3809_v43, %v5507_v12 }
 0x996   :  { %v3181_v60 = vrot.slane %v3167_v22, %v5743_v20  ;;  %5199 = vmatmul.mubr.msk.f32.gmra.mxu1 %vm322_vm2, %v5998_v34  ;;  %3497 = vmatprep.mubr.f32.mxu0 %v5445_v6 }
 0x997   :  { %3586 = vmatprep.mubr.f32.mxu1 %v5445_v6 }
 0x998   :  { %v3182_v11 = vcombine.low %v3174_v30, %v3181_v60 }
 0x999   :  { %5196 = vmatmul.mubr.msk.f32.gmra.mxu0 %vm322_vm2, %v6010_v9 }
 0x99a   :  { %v3189_v33 = vrot.slane %v3182_v11, %v5743_v20  ;;  %5200 = vmatmul.mubr.msk.f32.gmra.mxu1 %vm322_vm2, %v6010_v9  ;;  %3673 = vmatprep.mubr.f32.mxu0 %v5445_v6 }
 0x99b   :  { %3744 = vmatprep.mubr.f32.mxu1 %v5445_v6 }
 0x99c   :  { %3192 = vst.msk [vmem:[#allocation3 + $0x10] sm:$0xf] %vm5762_vm3, %v3189_v33 }
 0xa4d   :  { %v3481_v34 = vpop.f32.mrf.mxu0 }
 0xa4e   :  { %v3570_v32 = vpop.f32.mrf.mxu1  ;;  %v3482_v0 = vadd.f32 %v3481_v34, %v5666_v4 }
 0xa4f   :  { %v3483_v31 = vpop.f32.mrf.mxu0  ;;  %v3571_v13 = vadd.f32 %v3570_v32, %v5666_v4 }
 0xa50   :  { %v3572_v23 = vpop.f32.mrf.mxu1  ;;  %v3484_v3 = vadd.f32 %v3483_v31, %v5666_v4  ;;  %v3593_v33 = vmax.f32 %v3482_v0, 0.0  ;;  %v3824_v31 = vcombine.high %v3816_v61, %v3816_v61 }
 0xa51   :  { %v3487_v35 = vpop.f32.mrf.mxu0  ;;  %v3573_v8 = vadd.f32 %v3572_v23, %v5666_v4  ;;  %v3595_v32 = vmax.f32 %v3571_v13, 0.0  ;;  %v3825_v23 = vcombine.high %v3823_v14, %v3823_v14 }
 0xa52   :  { %v3576_v17 = vpop.f32.mrf.mxu1  ;;  %v3488_v50 = vadd.f32 %v3487_v35, %v5658_v58  ;;  %v3594_v60 = vmax.f32 %v3484_v3, 0.0  ;;  %v6268_v35 = vld [vmem:[%s6520_s1] sm:$0xff] }
 0xa53   :  { %v3489_v47 = vpop.f32.mrf.mxu0  ;;  %v3577_v1 = vadd.f32 %v3576_v17, %v5658_v58  ;;  %v3596_v34 = vmax.f32 %v3573_v8, 0.0  ;;  %v6290_v17 = vld [vmem:[%s6520_s1 + $0x10] sm:$0xff] }
 0xa54   :  { %v3578_v24 = vpop.f32.mrf.mxu1  ;;  %v3490_v56 = vadd.f32 %v3489_v47, %v5658_v58  ;;  %v3597_v22 = vmax.f32 %v3488_v50, 0.0  ;;  %v6301_v47 = vld [vmem:[%s6520_s1 + $0x18] sm:$0xff] }
 0xa55   :  { %v3493_v37 = vpop.f32.mrf.mxu0  ;;  %v3579_v7 = vadd.f32 %v3578_v24, %v5658_v58  ;;  %v3599_v11 = vmax.f32 %v3577_v1, 0.0 }
 0xa56   :  { %v3582_v49 = vpop.f32.mrf.mxu1  ;;  %v3494_v2 = vadd.f32 %v3493_v37, %v5650_v45  ;;  %v3598_v57 = vmax.f32 %v3490_v56, 0.0 }
 0xa57   :  { %v3495_v51 = vpop.f32.mrf.mxu0  ;;  %v3583_v19 = vadd.f32 %v3582_v49, %v5650_v45  ;;  %v3600_v30 = vmax.f32 %v3579_v7, 0.0 }
 0xa58   :  { %v3584_v16 = vpop.f32.mrf.mxu1  ;;  %v3496_v26 = vadd.f32 %v3495_v51, %v5650_v45  ;;  %v3601_v63 = vmax.f32 %v3494_v2, 0.0 }
 0xa59   :  { %v3499_v9 = vpop.f32.mrf.mxu0  ;;  %v3585_v53 = vadd.f32 %v3584_v16, %v5650_v45  ;;  %v3603_v18 = vmax.f32 %v3583_v19, 0.0 }
 0xa5a   :  { %v3588_v5 = vpop.f32.mrf.mxu1  ;;  %v3500_v42 = vadd.f32 %v3499_v9, %v5645_v39  ;;  %v3602_v10 = vmax.f32 %v3496_v26, 0.0 }
 0xa5b   :  { %v3501_v21 = vpop.f32.mrf.mxu0  ;;  %v3589_v40 = vadd.f32 %v3588_v5, %v5645_v39  ;;  %v3604_v62 = vmax.f32 %v3585_v53, 0.0 }
 0xa5c   :  { %v3502_v29 = vadd.f32 %v3501_v21, %v5645_v39  ;;  %v3590_v48 = vpop.f32.mrf.mxu1  ;;  %v3605_v59 = vmax.f32 %v3500_v42, 0.0 }
 0xa5d   :  { %v3591_v54 = vadd.f32 %v3590_v48, %v5645_v39  ;;  %v3607_v15 = vmax.f32 %v3589_v40, 0.0 }
 0xa5e   :  { %v3606_v25 = vmax.f32 %v3502_v29, 0.0 }
 0xa5f   :  { %v3608_v27 = vmax.f32 %v3591_v54, 0.0 }
 0xa60   :  { %3633 = vmatprep.subr.mxu0 %v3606_v25 }
 0xa61   :  { %3704 = vmatprep.subr.mxu1 %v3608_v27  ;;  %3634 = vmatpush1.msra.mxu0 %v3605_v59 }
 0xa62   :  { %3705 = vmatpush1.msra.mxu1 %v3607_v15  ;;  %3635 = vmatprep.subr.mxu0 %v3602_v10 }
 0xa63   :  { %3706 = vmatprep.subr.mxu1 %v3604_v62  ;;  %3636 = vmatpush1.msra.mxu0 %v3601_v63 }
 0xa64   :  { %3707 = vmatpush1.msra.mxu1 %v3603_v18  ;;  %3637 = vmatprep.subr.mxu0 %v3598_v57 }
 0xa65   :  { %3708 = vmatprep.subr.mxu1 %v3600_v30  ;;  %3638 = vmatpush1.msra.mxu0 %v3597_v22 }
 0xa66   :  { %3709 = vmatpush1.msra.mxu1 %v3599_v11  ;;  %3639 = vmatprep.subr.mxu0 %v3594_v60 }
 0xa67   :  { %3710 = vmatprep.subr.mxu1 %v3596_v34  ;;  %3640 = vmatpush1.msra.mxu0 %v3593_v33 }
 0xa68   :  { %3711 = vmatpush1.msra.mxu1 %v3595_v32  ;;  %5201 = vmatmul.mubr.msk.f32.vlgmr.msra.gmra.mxu0 %vm322_vm2, %v6045_v28 }
 0xa69   :  { %5202 = vmatmul.mubr.msk.f32.vlgmr.msra.gmra.mxu1 %vm322_vm2, %v6045_v28  ;;  %5208 = vmatprep.subr.msk.mxu0 %vm99_vm0, %v3824_v31  ;;  %v6279_v28 = vld [vmem:[%s6520_s1 + $0x8] sm:$0xff] }
 0xa6a   :  { %5214 = vmatprep.subr.msk.mxu1 %vm99_vm0, %v3825_v23  ;;  %5209 = vmatpush1.msk.msra.mxu0 %vm99_vm0, %v3816_v61 }
 0xa6b   :  { %3898 = vmatprep.mubr.f32.mxu0 %v5445_v6  ;;  %5215 = vmatpush1.msk.msra.mxu1 %vm99_vm0, %v3823_v14 }
 0xa6c   :  { %3987 = vmatprep.mubr.f32.mxu1 %v5445_v6  ;;  %5210 = vmatmul.mubr.msk.f32.vlgmr.msra.gmra.mxu0 %vm86_vm1, %v6268_v35 }
 0xa6d   :  { %5216 = vmatmul.mubr.msk.f32.vlgmr.msra.gmra.mxu1 %vm86_vm1, %v6268_v35  ;;  %3904 = vmatprep.mubr.f32.mxu0 %v5445_v6 }
 0xa6e   :  { %3993 = vmatprep.mubr.f32.mxu1 %v5445_v6 }
 0xa70   :  { %5211 = vmatmul.mubr.msk.f32.gmra.mxu0 %vm86_vm1, %v6279_v28 }
 0xa71   :  { %5217 = vmatmul.mubr.msk.f32.gmra.mxu1 %vm86_vm1, %v6279_v28  ;;  %3910 = vmatprep.mubr.f32.mxu0 %v5445_v6 }
 0xa72   :  { %3999 = vmatprep.mubr.f32.mxu1 %v5445_v6 }
 0xa74   :  { %5212 = vmatmul.mubr.msk.f32.gmra.mxu0 %vm86_vm1, %v6290_v17 }
 0xa75   :  { %5218 = vmatmul.mubr.msk.f32.gmra.mxu1 %vm86_vm1, %v6290_v17  ;;  %3916 = vmatprep.mubr.f32.mxu0 %v5445_v6 }
 0xa76   :  { %4005 = vmatprep.mubr.f32.mxu1 %v5445_v6 }
 0xa78   :  { %5213 = vmatmul.mubr.msk.f32.gmra.mxu0 %vm86_vm1, %v6301_v47 }
 0xa79   :  { %5219 = vmatmul.mubr.msk.f32.gmra.mxu1 %vm86_vm1, %v6301_v47  ;;  %4092 = vmatprep.mubr.f32.mxu0 %v5445_v6 }
 0xa7a   :  { %4181 = vmatprep.mubr.f32.mxu1 %v5445_v6 }
 0xb28   :  { %v3675_v24 = vpop.f32.mrf.mxu0 }
 0xb29   :  { %v3676_v37 = vadd.f32 %v3675_v24, %v5714_v46  ;;  %v3746_v49 = vpop.f32.mrf.mxu1 }
 0xb2a   :  { %v3747_v51 = vadd.f32 %v3746_v49, %v5714_v46  ;;  %v3677_v16 = vpop.f32.mrf.mxu0 }
 0xb2b   :  { %v5203_v9 = vmul.f32 -1.442695, %v3676_v37  ;;  %v3678_v5 = vadd.f32 %v3677_v16, %v5714_v46  ;;  %v3748_v52 = vpop.f32.mrf.mxu1 }
 0xb2c   :  { %v5205_v42 = vmul.f32 -1.442695, %v3747_v51  ;;  %v3749_v21 = vadd.f32 %v3748_v52, %v5714_v46  ;;  %v3900_v26 = vpop.f32.mrf.mxu0 }
 0xb2d   :  { %5356 = vpow2.f32 %v5203_v9  ;;  %v5204_v40 = vmul.f32 -1.442695, %v3678_v5  ;;  %v3989_v29 = vpop.f32.mrf.mxu1  ;;  %v3901_v27 = vadd.f32 %v3900_v26, %v5591_v55 }
 0xb2e   :  { %5358 = vpow2.f32 %v5205_v42  ;;  %v5206_v48 = vmul.f32 -1.442695, %v3749_v21  ;;  %v3902_v2 = vpop.f32.mrf.mxu0 }
 0xb2f   :  { %5360 = vpow2.f32 %v5204_v40  ;;  %v3991_v53 = vpop.f32.mrf.mxu1  ;;  %v3903_v3 = vadd.f32 %v3902_v2, %v5591_v55  ;;  %v3990_v40 = vadd.f32 %v3989_v29, %v5591_v55  ;;  %v6332_v29 = vld [vmem:[%s6522_s3] sm:$0xff] }
 0xb30   :  { %5362 = vpow2.f32 %v5206_v48  ;;  %v3906_v54 = vpop.f32.mrf.mxu0  ;;  %v3992_v42 = vadd.f32 %v3991_v53, %v5591_v55 }
 0xb31   :  { %v3995_v43 = vpop.f32.mrf.mxu1  ;;  %v3907_v15 = vadd.f32 %v3906_v54, %v5579_v41 }
 0xb32   :  { %v3908_v56 = vpop.f32.mrf.mxu0  ;;  %v3996_v9 = vadd.f32 %v3995_v43, %v5579_v41  ;;  %v4013_v43 = vmax.f32 %v3903_v3, 0.0  ;;  %v4015_v53 = vmax.f32 %v3992_v42, 0.0 }
 0xb33   :  { %v3997_v19 = vpop.f32.mrf.mxu1  ;;  %v3909_v0 = vadd.f32 %v3908_v56, %v5579_v41  ;;  %v4016_v54 = vmax.f32 %v3907_v15, 0.0 }
 0xb34   :  { %v3912_v25 = vpop.f32.mrf.mxu0  ;;  %v3998_v8 = vadd.f32 %v3997_v19, %v5579_v41  ;;  %v4018_v19 = vmax.f32 %v3996_v9, 0.0 }
 0xb35   :  { %v4001_v61 = vpop.f32.mrf.mxu1  ;;  %v3913_v33 = vadd.f32 %v3912_v25, %v5581_v44  ;;  %v4017_v48 = vmax.f32 %v3909_v0, 0.0  ;;  %v4012_v25 = vmax.f32 %v3901_v27, 0.0  ;;  %v6355_v0 = vld [vmem:[%s6522_s3 + $0x10] sm:$0xff] }
 0xb36   :  { %v3914_v50 = vpop.f32.mrf.mxu0  ;;  %v4002_v24 = vadd.f32 %v4001_v61, %v5581_v44  ;;  %v4019_v56 = vmax.f32 %v3998_v8, 0.0  ;;  %v4014_v61 = vmax.f32 %v3990_v40, 0.0 }
 0xb37   :  { %v4003_v7 = vpop.f32.mrf.mxu1  ;;  %v3915_v18 = vadd.f32 %v3914_v50, %v5581_v44  ;;  %v4020_v21 = vmax.f32 %v3913_v33, 0.0 }
 0xb38   :  { %v3918_v59 = vpop.f32.mrf.mxu0  ;;  %v4004_v34 = vadd.f32 %v4003_v7, %v5581_v44  ;;  %v4022_v2 = vmax.f32 %v4002_v24, 0.0 }
 0xb39   :  { %v4007_v1 = vpop.f32.mrf.mxu1  ;;  %v3919_v63 = vadd.f32 %v3918_v59, %v5577_v36  ;;  %v4021_v5 = vmax.f32 %v3915_v18, 0.0  ;;  %v6343_v59 = vld [vmem:[%s6522_s3 + $0x8] sm:$0xff] }
 0xb3a   :  { %v5357_v10 = vpop.eup %5356  ;;  %v3920_v62 = vpop.f32.mrf.mxu0  ;;  %v4008_v14 = vadd.f32 %v4007_v1, %v5577_v36  ;;  %v4023_v26 = vmax.f32 %v4004_v34, 0.0 }
 0xb3b   :  { %v5359_v13 = vpop.eup %5358  ;;  %v3763_v57 = vadd.f32 1.0, %v5357_v10  ;;  %v3921_v22 = vadd.f32 %v3920_v62, %v5577_v36  ;;  %v4009_v30 = vpop.f32.mrf.mxu1  ;;  %v4024_v51 = vmax.f32 %v3919_v63, 0.0  ;;  %v6367_v62 = vld [vmem:[%s6522_s3 + $0x18] sm:$0xff] }
 0xb3c   :  { %v5361_v60 = vpop.eup %5360  ;;  %v3765_v11 = vadd.f32 1.0, %v5359_v13  ;;  %v4010_v31 = vadd.f32 %v4009_v30, %v5577_v36  ;;  %v4026_v52 = vmax.f32 %v4008_v14, 0.0 }
 0xb3d   :  { %v5363_v32 = vpop.eup %5362  ;;  %5364 = vrcp.f32 %v3763_v57  ;;  %v3764_v23 = vadd.f32 1.0, %v5361_v60  ;;  %v4025_v37 = vmax.f32 %v3921_v22, 0.0 }
 0xb3e   :  { %5366 = vrcp.f32 %v3765_v11  ;;  %v3766_v49 = vadd.f32 1.0, %v5363_v32  ;;  %v4027_v16 = vmax.f32 %v4010_v31, 0.0 }
 0xb3f   :  { %5368 = vrcp.f32 %v3764_v23  ;;  %4052 = vmatprep.subr.mxu0 %v4025_v37 }
 0xb40   :  { %5370 = vrcp.f32 %v3766_v49  ;;  %4141 = vmatprep.subr.mxu1 %v4027_v16  ;;  %4053 = vmatpush1.msra.mxu0 %v4024_v51  ;;  %v5234_v49 = vld [vmem:[%s6519_s0 + $0x38] sm:$0xff] }
 0xb41   :  { %4142 = vmatpush1.msra.mxu1 %v4026_v52  ;;  %4054 = vmatprep.subr.mxu0 %v4021_v5 }
 0xb42   :  { %4143 = vmatprep.subr.mxu1 %v4023_v26  ;;  %4055 = vmatpush1.msra.mxu0 %v4020_v21 }
 0xb43   :  { %4144 = vmatpush1.msra.mxu1 %v4022_v2  ;;  %4056 = vmatprep.subr.mxu0 %v4017_v48  ;;  %v4422_v48 = vcombine.high %v5234_v49, %v5234_v49 }
 0xb44   :  { %4145 = vmatprep.subr.mxu1 %v4019_v56  ;;  %4057 = vmatpush1.msra.mxu0 %v4016_v54 }
 0xb45   :  { %4146 = vmatpush1.msra.mxu1 %v4018_v19  ;;  %4058 = vmatprep.subr.mxu0 %v4013_v43  ;;  %v4429_v43 = vrot.slane %v5234_v49, %v5507_v12 }
 0xb46   :  { %4147 = vmatprep.subr.mxu1 %v4015_v53  ;;  %4059 = vmatpush1.msra.mxu0 %v4012_v25 }
 0xb47   :  { %4148 = vmatpush1.msra.mxu1 %v4014_v61  ;;  %5220 = vmatmul.mubr.msk.f32.vlgmr.msra.gmra.mxu0 %vm322_vm2, %v6332_v29 }
 0xb48   :  { %5224 = vmatmul.mubr.msk.f32.vlgmr.msra.gmra.mxu1 %vm322_vm2, %v6332_v29  ;;  %4098 = vmatprep.mubr.f32.mxu0 %v5445_v6 }
 0xb49   :  { %4187 = vmatprep.mubr.f32.mxu1 %v5445_v6 }
 0xb4a   :  { %v5365_v50 = vpop.eup %5364 }
 0xb4b   :  { %v5367_v7 = vpop.eup %5366  ;;  %5221 = vmatmul.mubr.msk.f32.gmra.mxu0 %vm322_vm2, %v6343_v59 }
 0xb4c   :  { %v5369_v27 = vpop.eup %5368  ;;  %5225 = vmatmul.mubr.msk.f32.gmra.mxu1 %vm322_vm2, %v6343_v59  ;;  %4104 = vmatprep.mubr.f32.mxu0 %v5445_v6 }
 0xb4d   :  { %v5371_v3 = vpop.eup %5370  ;;  %v3779_v1 = vcombine.low %v5365_v50, %v5369_v27  ;;  %4193 = vmatprep.mubr.f32.mxu1 %v5445_v6 }
 0xb4e   :  { %v3780_v10 = vcombine.low %v5367_v7, %v5371_v3 }
 0xb4f   :  { %v3787_v15 = vrot.slane %v3779_v1, %v5743_v20  ;;  %5222 = vmatmul.mubr.msk.f32.gmra.mxu0 %vm322_vm2, %v6355_v0 }
 0xb50   :  { %v3794_v8 = vrot.slane %v3780_v10, %v5743_v20  ;;  %5226 = vmatmul.mubr.msk.f32.gmra.mxu1 %vm322_vm2, %v6355_v0  ;;  %4110 = vmatprep.mubr.f32.mxu0 %v5445_v6 }
 0xb51   :  { %4199 = vmatprep.mubr.f32.mxu1 %v5445_v6 }
 0xb52   :  { %v3795_v63 = vcombine.low %v3787_v15, %v3794_v8 }
 0xb53   :  { %5223 = vmatmul.mubr.msk.f32.gmra.mxu0 %vm322_vm2, %v6367_v62 }
 0xb54   :  { %v3802_v13 = vrot.slane %v3795_v63, %v5743_v20  ;;  %5227 = vmatmul.mubr.msk.f32.gmra.mxu1 %vm322_vm2, %v6367_v62  ;;  %4286 = vmatprep.mubr.f32.mxu0 %v5445_v6 }
 0xb55   :  { %4357 = vmatprep.mubr.f32.mxu1 %v5445_v6 }
 0xb56   :  { %3805 = vst.msk [vmem:[#allocation3 + $0x14] sm:$0xf] %vm5762_vm3, %v3802_v13 }
 0xc07   :  { %v4094_v57 = vpop.f32.mrf.mxu0 }
 0xc08   :  { %v4183_v18 = vpop.f32.mrf.mxu1  ;;  %v4095_v1 = vadd.f32 %v4094_v57, %v5666_v4 }
 0xc09   :  { %v4096_v14 = vpop.f32.mrf.mxu0  ;;  %v4184_v63 = vadd.f32 %v4183_v18, %v5666_v4 }
 0xc0a   :  { %v4185_v22 = vpop.f32.mrf.mxu1  ;;  %v4097_v50 = vadd.f32 %v4096_v14, %v5666_v4  ;;  %v4436_v14 = vrot.slane %v4422_v48, %v5507_v12  ;;  %v6402_v12 = vld [vmem:[%s6524_s5] sm:$0x1]  ;;  %s5448_s5 = smov [#allocation3]  }
 0xc0b   :  { %v4100_v30 = vpop.f32.mrf.mxu0  ;;  %v4186_v10 = vadd.f32 %v4185_v22, %v5666_v4  ;;  %v4206_v22 = vmax.f32 %v4095_v1, 0.0  ;;  %v4208_v18 = vmax.f32 %v4184_v63, 0.0  ;;  %s5038_s30 = sshll.u32 %s5448_s5, 4  ;;  %s5039_s30 = int_to_ptr.vmem [resolvable:$true] %s5038_s30 }
 0xc0c   :  { %v4189_v60 = vpop.f32.mrf.mxu1  ;;  %v4101_v19 = vadd.f32 %v4100_v30, %v5658_v58  ;;  %s5422_s8 = scalar_lea.vmem %s5039_s30, 512  ;;  %p5427_p1 = scmp.lt.s32.totalorder %s5039_s30, %s5039_s30 }
 0xc0d   :  { %v4102_v11 = vpop.f32.mrf.mxu0  ;;  %v4190_v7 = vadd.f32 %v4189_v60, %v5658_v58  ;;  %p5423_p0 = scmp.ne.s32.totalorder %s5039_s30, %s5422_s8  ;;  %p5428_p2 = scmp.lt.s32.totalorder %s5422_s8, %s5422_s8 }
 0xc0e   :  { %v4191_v33 = vpop.f32.mrf.mxu1  ;;  %v4103_v2 = vadd.f32 %v4102_v11, %v5658_v58  ;;  %v4210_v60 = vmax.f32 %v4101_v19, 0.0 }
 0xc0f   :  { %v4106_v34 = vpop.f32.mrf.mxu0  ;;  %v4192_v25 = vadd.f32 %v4191_v33, %v5658_v58  ;;  %v4207_v33 = vmax.f32 %v4097_v50, 0.0  ;;  %v4212_v57 = vmax.f32 %v4190_v7, 0.0  ;;  %p5429_p3 = por %p5428_p2, %p5427_p1 }
 0xc10   :  { %v4195_v31 = vpop.f32.mrf.mxu1  ;;  %v4107_v21 = vadd.f32 %v4106_v34, %v5650_v45  ;;  %v4211_v13 = vmax.f32 %v4103_v2, 0.0  ;;  %v4209_v34 = vmax.f32 %v4186_v10, 0.0 }
 0xc11   :  { %v4108_v32 = vpop.f32.mrf.mxu0  ;;  %v4196_v54 = vadd.f32 %v4195_v31, %v5650_v45  ;;  %v4213_v11 = vmax.f32 %v4192_v25, 0.0  ;;  %v4437_v31 = vcombine.high %v4429_v43, %v4429_v43  ;;  %p5430_p4 = pnand %p5429_p3, %p5423_p0 }
 0xc12   :  { %v4197_v23 = vpop.f32.mrf.mxu1  ;;  %v4109_v9 = vadd.f32 %v4108_v32, %v5650_v45  ;;  %v4214_v15 = vmax.f32 %v4107_v21, 0.0  ;;  %v4438_v32 = vcombine.high %v4436_v14, %v4436_v14 }
 0xc13   :  { %v4112_v24 = vpop.f32.mrf.mxu0  ;;  %v4198_v26 = vadd.f32 %v4197_v23, %v5650_v45  ;;  %v4216_v30 = vmax.f32 %v4196_v54, 0.0 }
 0xc14   :  { %v4201_v37 = vpop.f32.mrf.mxu1  ;;  %v4113_v51 = vadd.f32 %v4112_v24, %v5645_v39  ;;  %v4215_v27 = vmax.f32 %v4109_v9, 0.0 }
 0xc15   :  { %v4114_v16 = vpop.f32.mrf.mxu0  ;;  %v4202_v5 = vadd.f32 %v4201_v37, %v5645_v39  ;;  %v4217_v8 = vmax.f32 %v4198_v26, 0.0 }
 0xc16   :  { %v4115_v52 = vadd.f32 %v4114_v16, %v5645_v39  ;;  %v4203_v42 = vpop.f32.mrf.mxu1  ;;  %v4218_v53 = vmax.f32 %v4113_v51, 0.0 }
 0xc17   :  { %v4204_v40 = vadd.f32 %v4203_v42, %v5645_v39  ;;  %v4220_v3 = vmax.f32 %v4202_v5, 0.0 }
 0xc18   :  { %v4219_v56 = vmax.f32 %v4115_v52, 0.0 }
 0xc19   :  { %v4221_v61 = vmax.f32 %v4204_v40, 0.0 }
 0xc1a   :  { %4246 = vmatprep.subr.mxu0 %v4219_v56 }
 0xc1b   :  { %4317 = vmatprep.subr.mxu1 %v4221_v61  ;;  %4247 = vmatpush1.msra.mxu0 %v4218_v53 }
 0xc1c   :  { %4318 = vmatpush1.msra.mxu1 %v4220_v3  ;;  %4248 = vmatprep.subr.mxu0 %v4215_v27 }
 0xc1d   :  { %4319 = vmatprep.subr.mxu1 %v4217_v8  ;;  %4249 = vmatpush1.msra.mxu0 %v4214_v15 }
 0xc1e   :  { %4320 = vmatpush1.msra.mxu1 %v4216_v30  ;;  %4250 = vmatprep.subr.mxu0 %v4211_v13 }
 0xc1f   :  { %4321 = vmatprep.subr.mxu1 %v4213_v11  ;;  %4251 = vmatpush1.msra.mxu0 %v4210_v60 }
 0xc20   :  { %4322 = vmatpush1.msra.mxu1 %v4212_v57  ;;  %4252 = vmatprep.subr.mxu0 %v4207_v33 }
 0xc21   :  { %4323 = vmatprep.subr.mxu1 %v4209_v34  ;;  %4253 = vmatpush1.msra.mxu0 %v4206_v22 }
 0xc22   :  { %4324 = vmatpush1.msra.mxu1 %v4208_v18  ;;  %5228 = vmatmul.mubr.msk.f32.vlgmr.msra.gmra.mxu0 %vm322_vm2, %v6402_v12 }
 0xc23   :  { %5229 = vmatmul.mubr.msk.f32.vlgmr.msra.gmra.mxu1 %vm322_vm2, %v6402_v12  ;;  %5235 = vmatprep.subr.msk.mxu0 %vm99_vm0, %v4437_v31 }
 0xc24   :  { %5241 = vmatprep.subr.msk.mxu1 %vm99_vm0, %v4438_v32  ;;  %5236 = vmatpush1.msk.msra.mxu0 %vm99_vm0, %v4429_v43 }
 0xc25   :  { %4511 = vmatprep.mubr.f32.mxu0 %v5445_v6  ;;  %5242 = vmatpush1.msk.msra.mxu1 %vm99_vm0, %v4436_v14 }
 0xc26   :  { %4600 = vmatprep.mubr.f32.mxu1 %v5445_v6  ;;  %5237 = vmatmul.mubr.msk.f32.vlgmr.msra.gmra.mxu0 %vm86_vm1, %v6268_v35 }
 0xc27   :  { %5243 = vmatmul.mubr.msk.f32.vlgmr.msra.gmra.mxu1 %vm86_vm1, %v6268_v35  ;;  %4517 = vmatprep.mubr.f32.mxu0 %v5445_v6 }
 0xc28   :  { %4606 = vmatprep.mubr.f32.mxu1 %v5445_v6 }
 0xc2a   :  { %5238 = vmatmul.mubr.msk.f32.gmra.mxu0 %vm86_vm1, %v6279_v28 }
 0xc2b   :  { %5244 = vmatmul.mubr.msk.f32.gmra.mxu1 %vm86_vm1, %v6279_v28  ;;  %4523 = vmatprep.mubr.f32.mxu0 %v5445_v6 }
 0xc2c   :  { %4612 = vmatprep.mubr.f32.mxu1 %v5445_v6 }
 0xc2e   :  { %5239 = vmatmul.mubr.msk.f32.gmra.mxu0 %vm86_vm1, %v6290_v17 }
 0xc2f   :  { %5245 = vmatmul.mubr.msk.f32.gmra.mxu1 %vm86_vm1, %v6290_v17  ;;  %4529 = vmatprep.mubr.f32.mxu0 %v5445_v6 }
 0xc30   :  { %4618 = vmatprep.mubr.f32.mxu1 %v5445_v6 }
 0xc32   :  { %5240 = vmatmul.mubr.msk.f32.gmra.mxu0 %vm86_vm1, %v6301_v47 }
 0xc33   :  { %5246 = vmatmul.mubr.msk.f32.gmra.mxu1 %vm86_vm1, %v6301_v47  ;;  %4705 = vmatprep.mubr.f32.mxu0 %v5445_v6 }
 0xc34   :  { %4794 = vmatprep.mubr.f32.mxu1 %v5445_v6 }
 0xce2   :  { %v4288_v35 = vpop.f32.mrf.mxu0 }
 0xce3   :  { %v4289_v28 = vadd.f32 %v4288_v35, %v5714_v46  ;;  %v4359_v23 = vpop.f32.mrf.mxu1 }
 0xce4   :  { %v4360_v17 = vadd.f32 %v4359_v23, %v5714_v46  ;;  %v4290_v24 = vpop.f32.mrf.mxu0 }
 0xce5   :  { %v5230_v37 = vmul.f32 -1.442695, %v4289_v28  ;;  %v4291_v49 = vadd.f32 %v4290_v24, %v5714_v46  ;;  %v4361_v51 = vpop.f32.mrf.mxu1 }
 0xce6   :  { %v5232_v16 = vmul.f32 -1.442695, %v4360_v17  ;;  %v4362_v9 = vadd.f32 %v4361_v51, %v5714_v46  ;;  %v4513_v5 = vpop.f32.mrf.mxu0 }
 0xce7   :  { %5372 = vpow2.f32 %v5230_v37  ;;  %v5231_v47 = vmul.f32 -1.442695, %v4291_v49  ;;  %v4602_v52 = vpop.f32.mrf.mxu1  ;;  %v4514_v61 = vadd.f32 %v4513_v5, %v5591_v55 }
 0xce8   :  { %5374 = vpow2.f32 %v5232_v16  ;;  %v5233_v42 = vmul.f32 -1.442695, %v4362_v9  ;;  %v4515_v21 = vpop.f32.mrf.mxu0 }
 0xce9   :  { %5376 = vpow2.f32 %v5231_v47  ;;  %v4604_v26 = vpop.f32.mrf.mxu1  ;;  %v4516_v50 = vadd.f32 %v4515_v21, %v5591_v55 }
 0xcea   :  { %5378 = vpow2.f32 %v5233_v42  ;;  %v4519_v40 = vpop.f32.mrf.mxu0  ;;  %v4605_v16 = vadd.f32 %v4604_v26, %v5591_v55 }
 0xceb   :  { %v4608_v48 = vpop.f32.mrf.mxu1  ;;  %v4520_v3 = vadd.f32 %v4519_v40, %v5579_v41 }
 0xcec   :  { %v4521_v2 = vpop.f32.mrf.mxu0  ;;  %v4609_v37 = vadd.f32 %v4608_v48, %v5579_v41  ;;  %v4625_v48 = vmax.f32 %v4514_v61, 0.0  ;;  %v4628_v26 = vmax.f32 %v4605_v16, 0.0 }
 0xced   :  { %v4610_v54 = vpop.f32.mrf.mxu1  ;;  %v4522_v1 = vadd.f32 %v4521_v2, %v5579_v41  ;;  %v4629_v42 = vmax.f32 %v4520_v3, 0.0 }
 0xcee   :  { %v4525_v56 = vpop.f32.mrf.mxu0  ;;  %v4611_v10 = vadd.f32 %v4610_v54, %v5579_v41  ;;  %v4626_v41 = vmax.f32 %v4516_v50, 0.0  ;;  %v4631_v40 = vmax.f32 %v4609_v37, 0.0 }
 0xcef   :  { %v4614_v43 = vpop.f32.mrf.mxu1  ;;  %v4526_v22 = vadd.f32 %v4525_v56, %v5581_v44  ;;  %v4630_v5 = vmax.f32 %v4522_v1, 0.0 }
 0xcf0   :  { %v4527_v19 = vpop.f32.mrf.mxu0  ;;  %v4615_v35 = vadd.f32 %v4614_v43, %v5581_v44  ;;  %v4632_v21 = vmax.f32 %v4611_v10, 0.0 }
 0xcf1   :  { %v4616_v25 = vpop.f32.mrf.mxu1  ;;  %v4528_v30 = vadd.f32 %v4527_v19, %v5581_v44 }
 0xcf2   :  { %v4531_v53 = vpop.f32.mrf.mxu0  ;;  %v4617_v34 = vadd.f32 %v4616_v25, %v5581_v44  ;;  %v4603_v44 = vadd.f32 %v4602_v52, %v5591_v55  ;;  %v4635_v47 = vmax.f32 %v4615_v35, 0.0 }
 0xcf3   :  { %v4620_v7 = vpop.f32.mrf.mxu1  ;;  %v4532_v15 = vadd.f32 %v4531_v53, %v5577_v36  ;;  %v4634_v49 = vmax.f32 %v4528_v30, 0.0 }
 0xcf4   :  { %v5373_v27 = vpop.eup %5372  ;;  %v4533_v8 = vpop.f32.mrf.mxu0  ;;  %v4621_v14 = vadd.f32 %v4620_v7, %v5577_v36  ;;  %v4636_v9 = vmax.f32 %v4617_v34, 0.0  ;;  %v4627_v2 = vmax.f32 %v4603_v44, 0.0 }
 0xcf5   :  { %v5375_v63 = vpop.eup %5374  ;;  %v4376_v13 = vadd.f32 1.0, %v5373_v27  ;;  %v4534_v60 = vadd.f32 %v4533_v8, %v5577_v36  ;;  %v4622_v11 = vpop.f32.mrf.mxu1  ;;  %v4637_v17 = vmax.f32 %v4532_v15, 0.0 }
 0xcf6   :  { %v5377_v33 = vpop.eup %5376  ;;  %v4378_v57 = vadd.f32 1.0, %v5375_v63  ;;  %v4623_v31 = vadd.f32 %v4622_v11, %v5577_v36  ;;  %v4639_v51 = vmax.f32 %v4621_v14, 0.0  ;;  %v4633_v36 = vmax.f32 %v4526_v22, 0.0 }
 0xcf7   :  { %v5379_v18 = vpop.eup %5378  ;;  %5380 = vrcp.f32 %v4376_v13  ;;  %v4377_v32 = vadd.f32 1.0, %v5377_v33  ;;  %v4638_v28 = vmax.f32 %v4534_v60, 0.0 }
 0xcf8   :  { %5382 = vrcp.f32 %v4378_v57  ;;  %v4379_v23 = vadd.f32 1.0, %v5379_v18  ;;  %v4640_v24 = vmax.f32 %v4623_v31, 0.0 }
 0xcf9   :  { %5384 = vrcp.f32 %v4377_v32  ;;  %4665 = vmatprep.subr.mxu0 %v4638_v28 }
 0xcfa   :  { %5386 = vrcp.f32 %v4379_v23  ;;  %4754 = vmatprep.subr.mxu1 %v4640_v24  ;;  %4666 = vmatpush1.msra.mxu0 %v4637_v17 }
 0xcfb   :  { %4755 = vmatpush1.msra.mxu1 %v4639_v51  ;;  %4667 = vmatprep.subr.mxu0 %v4634_v49 }
 0xcfc   :  { %4756 = vmatprep.subr.mxu1 %v4636_v9  ;;  %4668 = vmatpush1.msra.mxu0 %v4633_v36 }
 0xcfd   :  { %4757 = vmatpush1.msra.mxu1 %v4635_v47  ;;  %4669 = vmatprep.subr.mxu0 %v4630_v5 }
 0xcfe   :  { %4758 = vmatprep.subr.mxu1 %v4632_v21  ;;  %4670 = vmatpush1.msra.mxu0 %v4629_v42 }
 0xcff   :  { %4759 = vmatpush1.msra.mxu1 %v4631_v40  ;;  %4671 = vmatprep.subr.mxu0 %v4626_v41 }
 0xd00   :  { %4760 = vmatprep.subr.mxu1 %v4628_v26  ;;  %4672 = vmatpush1.msra.mxu0 %v4625_v48 }
 0xd01   :  { %4761 = vmatpush1.msra.mxu1 %v4627_v2  ;;  %5247 = vmatmul.mubr.msk.f32.vlgmr.msra.gmra.mxu0 %vm322_vm2, %v6332_v29 }
 0xd02   :  { %5251 = vmatmul.mubr.msk.f32.vlgmr.msra.gmra.mxu1 %vm322_vm2, %v6332_v29  ;;  %4711 = vmatprep.mubr.f32.mxu0 %v5445_v6 }
 0xd03   :  { %4800 = vmatprep.mubr.f32.mxu1 %v5445_v6 }
 0xd04   :  { %v5381_v55 = vpop.eup %5380 }
 0xd05   :  { %v5383_v52 = vpop.eup %5382  ;;  %5248 = vmatmul.mubr.msk.f32.gmra.mxu0 %vm322_vm2, %v6343_v59 }
 0xd06   :  { %v5385_v54 = vpop.eup %5384  ;;  %5252 = vmatmul.mubr.msk.f32.gmra.mxu1 %vm322_vm2, %v6343_v59  ;;  %4717 = vmatprep.mubr.f32.mxu0 %v5445_v6 }
 0xd07   :  { %v5387_v56 = vpop.eup %5386  ;;  %v4392_v43 = vcombine.low %v5381_v55, %v5385_v54  ;;  %4806 = vmatprep.mubr.f32.mxu1 %v5445_v6 }
 0xd08   :  { %v4393_v29 = vcombine.low %v5383_v52, %v5387_v56 }
 0xd09   :  { %v4400_v19 = vrot.slane %v4392_v43, %v5743_v20  ;;  %5249 = vmatmul.mubr.msk.f32.gmra.mxu0 %vm322_vm2, %v6355_v0 }
 0xd0a   :  { %v4407_v25 = vrot.slane %v4393_v29, %v5743_v20  ;;  %5253 = vmatmul.mubr.msk.f32.gmra.mxu1 %vm322_vm2, %v6355_v0  ;;  %4723 = vmatprep.mubr.f32.mxu0 %v5445_v6 }
 0xd0b   :  { %4812 = vmatprep.mubr.f32.mxu1 %v5445_v6 }
 0xd0c   :  { %v4408_v59 = vcombine.low %v4400_v19, %v4407_v25 }
 0xd0d   :  { %5250 = vmatmul.mubr.msk.f32.gmra.mxu0 %vm322_vm2, %v6367_v62 }
 0xd0e   :  { %v4415_v53 = vrot.slane %v4408_v59, %v5743_v20  ;;  %5254 = vmatmul.mubr.msk.f32.gmra.mxu1 %vm322_vm2, %v6367_v62  ;;  %4899 = vmatprep.mubr.f32.mxu0 %v5445_v6 }
 0xd0f   :  { %4970 = vmatprep.mubr.f32.mxu1 %v5445_v6 }
 0xd10   :  { %4418 = vst.msk [vmem:[#allocation3 + $0x18] sm:$0xf] %vm5762_vm3, %v4415_v53 }
 0xdc1   :  { %v4707_v0 = vpop.f32.mrf.mxu0 }
 0xdc2   :  { %v4796_v61 = vpop.f32.mrf.mxu1 }
 0xdc3   :  { %v4709_v50 = vpop.f32.mrf.mxu0  ;;  %v4797_v44 = vadd.f32 %v4796_v61, %v5666_v4 }
 0xdc4   :  { %v4798_v7 = vpop.f32.mrf.mxu1  ;;  %v4710_v37 = vadd.f32 %v4709_v50, %v5666_v4 }
 0xdc5   :  { %v4713_v27 = vpop.f32.mrf.mxu0  ;;  %v4799_v36 = vadd.f32 %v4798_v7, %v5666_v4  ;;  %v4821_v26 = vmax.f32 %v4797_v44, 0.0 }
 0xdc6   :  { %v4802_v3 = vpop.f32.mrf.mxu1  ;;  %v4714_v28 = vadd.f32 %v4713_v27, %v5658_v58 }
 0xdc7   :  { %v4715_v1 = vpop.f32.mrf.mxu0  ;;  %v4803_v49 = vadd.f32 %v4802_v3, %v5658_v58  ;;  %v4822_v48 = vmax.f32 %v4799_v36, 0.0 }
 0xdc8   :  { %v4804_v10 = vpop.f32.mrf.mxu1  ;;  %v4716_v18 = vadd.f32 %v4715_v1, %v5658_v58  ;;  %v4823_v42 = vmax.f32 %v4714_v28, 0.0 }
 0xdc9   :  { %v4719_v15 = vpop.f32.mrf.mxu0  ;;  %v4805_v23 = vadd.f32 %v4804_v10, %v5658_v58  ;;  %v4820_v58 = vmax.f32 %v4710_v37, 0.0  ;;  %v4825_v41 = vmax.f32 %v4803_v49, 0.0 }
 0xdca   :  { %v4808_v8 = vpop.f32.mrf.mxu1  ;;  %v4720_v22 = vadd.f32 %v4719_v15, %v5650_v45  ;;  %v4824_v5 = vmax.f32 %v4716_v18, 0.0 }
 0xdcb   :  { %v4721_v63 = vpop.f32.mrf.mxu0  ;;  %v4809_v32 = vadd.f32 %v4808_v8, %v5650_v45  ;;  %v4826_v21 = vmax.f32 %v4805_v23, 0.0 }
 0xdcc   :  { %v4810_v13 = vpop.f32.mrf.mxu1  ;;  %v4722_v60 = vadd.f32 %v4721_v63, %v5650_v45  ;;  %v4827_v9 = vmax.f32 %v4720_v22, 0.0 }
 0xdcd   :  { %v4725_v62 = vpop.f32.mrf.mxu0  ;;  %v4811_v34 = vadd.f32 %v4810_v13, %v5650_v45  ;;  %v4829_v47 = vmax.f32 %v4809_v32, 0.0 }
 0xdce   :  { %v4814_v30 = vpop.f32.mrf.mxu1  ;;  %v4726_v14 = vadd.f32 %v4725_v62, %v5645_v39  ;;  %v4828_v51 = vmax.f32 %v4722_v60, 0.0 }
 0xdcf   :  { %v4727_v6 = vpop.f32.mrf.mxu0  ;;  %v4815_v11 = vadd.f32 %v4814_v30, %v5645_v39  ;;  %v4830_v45 = vmax.f32 %v4811_v34, 0.0 }
 0xdd0   :  { %v4728_v33 = vadd.f32 %v4727_v6, %v5645_v39  ;;  %v4816_v57 = vpop.f32.mrf.mxu1  ;;  %v4831_v17 = vmax.f32 %v4726_v14, 0.0 }
 0xdd1   :  { %v4817_v31 = vadd.f32 %v4816_v57, %v5645_v39  ;;  %v4833_v16 = vmax.f32 %v4815_v11, 0.0  ;;  %v4708_v39 = vadd.f32 %v4707_v0, %v5666_v4 }
 0xdd2   :  { %v4832_v35 = vmax.f32 %v4728_v33, 0.0 }
 0xdd3   :  { %v4834_v24 = vmax.f32 %v4817_v31, 0.0  ;;  %v4819_v40 = vmax.f32 %v4708_v39, 0.0 }
 0xdd4   :  { %4859 = vmatprep.subr.mxu0 %v4832_v35 }
 0xdd5   :  { %4930 = vmatprep.subr.mxu1 %v4834_v24  ;;  %4860 = vmatpush1.msra.mxu0 %v4831_v17 }
 0xdd6   :  { %4931 = vmatpush1.msra.mxu1 %v4833_v16  ;;  %4861 = vmatprep.subr.mxu0 %v4828_v51 }
 0xdd7   :  { %4932 = vmatprep.subr.mxu1 %v4830_v45  ;;  %4862 = vmatpush1.msra.mxu0 %v4827_v9 }
 0xdd8   :  { %4933 = vmatpush1.msra.mxu1 %v4829_v47  ;;  %4863 = vmatprep.subr.mxu0 %v4824_v5 }
 0xdd9   :  { %4934 = vmatprep.subr.mxu1 %v4826_v21  ;;  %4864 = vmatpush1.msra.mxu0 %v4823_v42 }
 0xdda   :  { %4935 = vmatpush1.msra.mxu1 %v4825_v41  ;;  %4865 = vmatprep.subr.mxu0 %v4820_v58 }
 0xddb   :  { %4936 = vmatprep.subr.mxu1 %v4822_v48  ;;  %4866 = vmatpush1.msra.mxu0 %v4819_v40 }
 0xddc   :  { %4937 = vmatpush1.msra.mxu1 %v4821_v26  ;;  %5255 = vmatmul.mubr.msk.f32.vlgmr.msra.gmra.mxu0 %vm322_vm2, %v6402_v12 }
 0xddd   :  { %5256 = vmatmul.mubr.msk.f32.vlgmr.msra.gmra.mxu1 %vm322_vm2, %v6402_v12 }
 0xe9c   :  { %v4901_v4 = vpop.f32.mrf.mxu0 }
 0xe9d   :  { %v4902_v2 = vadd.f32 %v4901_v4, %v5714_v46  ;;  %v4972_v55 = vpop.f32.mrf.mxu1 }
 0xe9e   :  { %v4973_v52 = vadd.f32 %v4972_v55, %v5714_v46  ;;  %v4903_v54 = vpop.f32.mrf.mxu0 }
 0xe9f   :  { %v5257_v56 = vmul.f32 -1.442695, %v4902_v2  ;;  %v4904_v43 = vadd.f32 %v4903_v54, %v5714_v46  ;;  %v4974_v29 = vpop.f32.mrf.mxu1 }
 0xea0   :  { %v5259_v19 = vmul.f32 -1.442695, %v4973_v52  ;;  %v4975_v25 = vadd.f32 %v4974_v29, %v5714_v46 }
 0xea1   :  { %5388 = vpow2.f32 %v5257_v56  ;;  %v5258_v59 = vmul.f32 -1.442695, %v4904_v43 }
 0xea2   :  { %5390 = vpow2.f32 %v5259_v19  ;;  %v5260_v53 = vmul.f32 -1.442695, %v4975_v25 }
 0xea3   :  { %5392 = vpow2.f32 %v5258_v59 }
 0xea4   :  { %5394 = vpow2.f32 %v5260_v53 }
 0xeae   :  { %v5389_v12 = vpop.eup %5388 }
 0xeaf   :  { %v5391_v0 = vpop.eup %5390  ;;  %v4989_v61 = vadd.f32 1.0, %v5389_v12 }
 0xeb0   :  { %v5393_v50 = vpop.eup %5392  ;;  %v4991_v7 = vadd.f32 1.0, %v5391_v0 }
 0xeb1   :  { %v5395_v27 = vpop.eup %5394  ;;  %5396 = vrcp.f32 %v4989_v61  ;;  %v4990_v3 = vadd.f32 1.0, %v5393_v50 }
 0xeb2   :  { %5398 = vrcp.f32 %v4991_v7  ;;  %v4992_v1 = vadd.f32 1.0, %v5395_v27 }
 0xeb3   :  { %5400 = vrcp.f32 %v4990_v3 }
 0xeb4   :  { %5402 = vrcp.f32 %v4992_v1 }
 0xebe   :  { %v5397_v10 = vpop.eup %5396 }
 0xebf   :  { %v5399_v46 = vpop.eup %5398 }
 0xec0   :  { %v5401_v15 = vpop.eup %5400 }
 0xec1   :  { %v5403_v8 = vpop.eup %5402  ;;  %v5005_v63 = vcombine.low %v5397_v10, %v5401_v15 }
 0xec2   :  { %v5006_v13 = vcombine.low %v5399_v46, %v5403_v8 }
 0xec3   :  { %v5013_v62 = vrot.slane %v5005_v63, %v5743_v20 }
 0xec4   :  { %v5020_v30 = vrot.slane %v5006_v13, %v5743_v20 }
 0xec6   :  { %v5021_v14 = vcombine.low %v5013_v62, %v5020_v30 }
 0xec8   :  { %v5028_v6 = vrot.slane %v5021_v14, %v5743_v20 }
 0xeca   :  { %5031 = vst.msk [vmem:[#allocation3 + $0x1c] sm:$0xf] %vm5762_vm3, %v5028_v6 }
 0xecb   :  { %5433 = shalt.err (!%p5430_p4)
}
 0xecc   :  { %5041 = dma.vmem_to_hbm [thread:$0]  %s5039_s30, 512, %s6526_s7, [#allocation4]  }
 0xecd   :  { %5442 = dma.done.wait [#allocation4], 512  }
 0xece   :  { %5443 = vsyncadd [#allocation4], 4294966784 }
 0xecf   :  { %5045 = vsyncpa [#allocation4], 1 }

</bundles_post_ra>
